<compile_context>
chip_gen: v5e
topology: v5e:2x2
jax: 0.10.0
libtpu: 0.0.40
codegen_flags: <defaults>
</compile_context>

<pallas_src>
import math

import jax
import jax.numpy as jnp
from jax import lax
from jax.experimental import pallas as pl
from jax.experimental.pallas import tpu as pltpu

VOCAB = 64        # input_size (kept small)
HIDDEN = 128      # hidden_size (lane-aligned; stands in for 512)
SEQ_LEN = 8       # tokens processed per kernel launch


def _gru_seq_kernel(gx_ref,       # (T, 3H) f32: per-token input projection (+folded r/z biases)
                    whh_ref,      # (H, 3H) f32: W_hh^T, gate order [r | z | n]
                    bhh_n_ref,    # (1, H)  f32: n-gate b_hh (must stay inside r * (...))
                    h0_ref,       # (1, H)  f32: initial hidden
                    out_ref):     # (T, H)  f32: hidden state after every step
    H = h0_ref.shape[-1]
    T = gx_ref.shape[0]

    def step(i, h):
        # Pre-gathered input projection row:
        #   [gx_r + b_ir + b_hr | gx_z + b_iz + b_hz | gx_n + b_in]
        gx = gx_ref[pl.ds(i, 1), :]                                    # (1, 3H)

        # Recurrent projection on the MXU (f32 weights, f32 accumulate).
        gh = jnp.dot(h, whh_ref[...],
                     preferred_element_type=jnp.float32)               # (1, 3H)

        # PyTorch GRU gate order along the lane axis: [r | z | n].
        rz = jax.nn.sigmoid(gx[:, :2 * H] + gh[:, :2 * H])             # one EUP pass for r,z
        r = rz[:, :H]
        z = rz[:, H:]
        n = jnp.tanh(gx[:, 2 * H:] + r * (gh[:, 2 * H:] + bhh_n_ref[...]))

        h_new = n + z * (h - n)                                        # == (1-z)*n + z*h

        out_ref[pl.ds(i, 1), :] = h_new                                # row of the (T,H) tile
        return h_new

    lax.fori_loop(0, T, step, h0_ref[...], unroll=True)


def encoder_rnn_forward(tokens, hidden0, kparams):
    """Run the encoder over a whole token sequence in ONE pallas_call.

    tokens: int32 (T,)   hidden0: f32 (1, 1, H)
    Returns (outputs (T, 1, H), final hidden (1, 1, H)) — identical to calling the
    PyTorch EncoderRNN.forward once per token while threading the hidden state.
    """
    T = int(tokens.shape[0])
    H = HIDDEN
    h0 = hidden0.reshape(1, H).astype(jnp.float32)

    # Wrapper-side pre-gather of the input projection (vocab-size independent kernel).
    emb_rows = kparams["embedding"][tokens]                            # (T, H)
    gx_seq = (jnp.dot(emb_rows, kparams["w_ih_t"],
                      precision=lax.Precision.HIGHEST)
              + kparams["gx_bias"]).astype(jnp.float32)                # (T, 3H)

    out = pl.pallas_call(
        _gru_seq_kernel,
        out_shape=jax.ShapeDtypeStruct((T, H), jnp.float32),
        grid=(1,),
        in_specs=[
            pl.BlockSpec((T, 3 * H), lambda i: (0, 0)),   # gx_seq (VMEM resident)
            pl.BlockSpec((H, 3 * H), lambda i: (0, 0)),   # W_hh^T (VMEM resident)
            pl.BlockSpec((1, H),     lambda i: (0, 0)),   # b_hh (n gate only)
            pl.BlockSpec((1, H),     lambda i: (0, 0)),   # initial hidden
        ],
        out_specs=pl.BlockSpec((T, H), lambda i: (0, 0)),
        compiler_params=pltpu.CompilerParams(
            dimension_semantics=("arbitrary",)),
    )(gx_seq, kparams["w_hh_t"], kparams["b_hh_n"], h0)

    outputs = out.reshape(T, 1, H)
    hidden_final = out[-1].reshape(1, 1, H)
    return outputs, hidden_final


def init_master_params(key, vocab=VOCAB, hidden=HIDDEN):
    """f32 parameters mimicking PyTorch defaults (embedding ~ N(0,1),
    GRU params ~ U(-1/sqrt(H), 1/sqrt(H))); gate order [r | z | n]."""
    k_emb, k_wih, k_whh, k_bih, k_bhh = jax.random.split(key, 5)
    bound = 1.0 / math.sqrt(hidden)
    return {
        "embedding": jax.random.normal(k_emb, (vocab, hidden), jnp.float32),
        "w_ih_t": jax.random.uniform(k_wih, (hidden, 3 * hidden), jnp.float32, -bound, bound),
        "w_hh_t": jax.random.uniform(k_whh, (hidden, 3 * hidden), jnp.float32, -bound, bound),
        "b_ih": jax.random.uniform(k_bih, (1, 3 * hidden), jnp.float32, -bound, bound),
        "b_hh": jax.random.uniform(k_bhh, (1, 3 * hidden), jnp.float32, -bound, bound),
    }


def prepare_kernel_params(master, hidden=HIDDEN):
    """Fold the r/z halves of b_hh (additive outside any gating product -> exact) into
    the input-projection bias; keep the n-gate b_hh separate and W_hh in f32."""
    H = hidden
    b_fold = jnp.concatenate(
        [master["b_hh"][:, :2 * H], jnp.zeros((1, H), jnp.float32)], axis=1)
    return {
        "embedding": master["embedding"],                         # (VOCAB, H)
        "w_ih_t": master["w_ih_t"],                               # (H, 3H)
        "gx_bias": master["b_ih"] + b_fold,                       # (1, 3H)
        "w_hh_t": master["w_hh_t"].astype(jnp.float32),           # (H, 3H) f32 (fidelity)
        "b_hh_n": master["b_hh"][:, 2 * H:].astype(jnp.float32),  # (1, H)
    }


def _reference_f32(tokens, hidden0, master):
    """Pure-f32 JAX reference: PyTorch EncoderRNN.forward applied once per token."""
    H = HIDDEN
    hp = lax.Precision.HIGHEST
    h = hidden0.reshape(1, H)
    outs = []
    for t in range(int(tokens.shape[0])):
        x = master["embedding"][tokens[t]].reshape(1, H)
        gx = jnp.dot(x, master["w_ih_t"], precision=hp) + master["b_ih"]
        gh = jnp.dot(h, master["w_hh_t"], precision=hp) + master["b_hh"]
        r = jax.nn.sigmoid(gx[:, :H] + gh[:, :H])
        z = jax.nn.sigmoid(gx[:, H:2 * H] + gh[:, H:2 * H])
        n = jnp.tanh(gx[:, 2 * H:] + r * gh[:, 2 * H:])
        h = (1.0 - z) * n + z * h
        outs.append(h.reshape(1, 1, H))
    return jnp.concatenate(outs, axis=0), h.reshape(1, 1, H)


if __name__ == "__main__":
    key = jax.random.PRNGKey(0)
    k_params, k_tok = jax.random.split(key)

    master = init_master_params(k_params)
    kparams = prepare_kernel_params(master)

    tokens = jax.random.randint(k_tok, (SEQ_LEN,), 0, VOCAB, dtype=jnp.int32)
    hidden0 = jnp.zeros((1, 1, HIDDEN), jnp.float32)          # init_hidden()

    outputs, hidden_final = encoder_rnn_forward(tokens, hidden0, kparams)
    outputs, hidden_final = jax.block_until_ready((outputs, hidden_final))
    assert outputs.shape == (SEQ_LEN, 1, HIDDEN)
    assert hidden_final.shape == (1, 1, HIDDEN)

    # All-f32 kernel path -> compare directly against exact f32 PyTorch semantics.
    f_out, f_hid = _reference_f32(tokens, hidden0, master)
    assert jnp.allclose(outputs, f_out, atol=1e-3, rtol=1e-3), \
        float(jnp.max(jnp.abs(outputs - f_out)))
    assert jnp.allclose(hidden_final, f_hid, atol=1e-3, rtol=1e-3), \
        float(jnp.max(jnp.abs(hidden_final - f_hid)))

    print("KERNEL_OK")
</pallas_src>

<mosaic_0001>
module attributes {stable_mosaic.version = 11 : i64} {
  func.func @_gru_seq_kernel(%arg0: i32, %arg1: memref<8x384xf32, #tpu.memory_space<vmem>>, %arg2: memref<128x384xf32, #tpu.memory_space<vmem>>, %arg3: memref<1x128xf32, #tpu.memory_space<vmem>>, %arg4: memref<1x128xf32, #tpu.memory_space<vmem>>, %arg5: memref<8x128xf32, #tpu.memory_space<vmem>>) attributes {dimension_semantics = [#tpu.dimension_semantics<arbitrary>], iteration_bounds = array<i64: 1>, scalar_prefetch = 0 : i64, scratch_operands = 0 : i64, tpu.core_type = #tpu.core_type<tc>, window_params = [{pipeline_mode = #tpu.pipeline_mode<synchronous>, transform_indices = @transform_0, window_bounds = array<i64: 8, 384>}, {pipeline_mode = #tpu.pipeline_mode<synchronous>, transform_indices = @transform_1, window_bounds = array<i64: 128, 384>}, {pipeline_mode = #tpu.pipeline_mode<synchronous>, transform_indices = @transform_2, window_bounds = array<i64: 1, 128>}, {pipeline_mode = #tpu.pipeline_mode<synchronous>, transform_indices = @transform_3, window_bounds = array<i64: 1, 128>}, {pipeline_mode = #tpu.pipeline_mode<synchronous>, transform_indices = @transform_4, window_bounds = array<i64: 8, 128>}]} {
    %c0 = arith.constant 0 : index
    %c0_0 = arith.constant 0 : index
    %0 = vector.load %arg4[%c0, %c0_0] : memref<1x128xf32, #tpu.memory_space<vmem>>, vector<1x128xf32>
    %c0_i32 = arith.constant 0 : i32
    %1 = arith.index_cast %c0_i32 : i32 to index
    %c0_1 = arith.constant 0 : index
    %2 = vector.load %arg1[%1, %c0_1] : memref<8x384xf32, #tpu.memory_space<vmem>>, vector<1x384xf32>
    %c0_2 = arith.constant 0 : index
    %c0_3 = arith.constant 0 : index
    %3 = vector.load %arg2[%c0_2, %c0_3] : memref<128x384xf32, #tpu.memory_space<vmem>>, vector<128x384xf32>
    %cst = arith.constant dense<0.000000e+00> : vector<1x384xf32>
    %4 = tpu.matmul %0, %3, %cst {dimension_numbers = #tpu.dot_dimension_numbers<[1], [0], [0], [1], [0, 0, 1, 1], [], []>} : vector<1x128xf32>, vector<128x384xf32>, vector<1x384xf32> -> vector<1x384xf32>
    %5 = vector.extract_strided_slice %2 {offsets = [0, 0], sizes = [1, 256], strides = [1, 1]} : vector<1x384xf32> to vector<1x256xf32>
    %6 = vector.extract_strided_slice %4 {offsets = [0, 0], sizes = [1, 256], strides = [1, 1]} : vector<1x384xf32> to vector<1x256xf32>
    %7 = arith.addf %5, %6 : vector<1x256xf32>
    %8 = arith.negf %7 : vector<1x256xf32>
    %9 = math.exp %8 : vector<1x256xf32>
    %cst_4 = arith.constant 1.000000e+00 : f32
    %10 = vector.broadcast %cst_4 : f32 to vector<1x256xf32>
    %11 = arith.addf %10, %9 : vector<1x256xf32>
    %12 = arith.divf %10, %11 : vector<1x256xf32>
    %13 = vector.extract_strided_slice %12 {offsets = [0, 0], sizes = [1, 128], strides = [1, 1]} : vector<1x256xf32> to vector<1x128xf32>
    %14 = vector.extract_strided_slice %12 {offsets = [0, 128], sizes = [1, 128], strides = [1, 1]} : vector<1x256xf32> to vector<1x128xf32>
    %15 = vector.extract_strided_slice %2 {offsets = [0, 256], sizes = [1, 128], strides = [1, 1]} : vector<1x384xf32> to vector<1x128xf32>
    %16 = vector.extract_strided_slice %4 {offsets = [0, 256], sizes = [1, 128], strides = [1, 1]} : vector<1x384xf32> to vector<1x128xf32>
    %c0_5 = arith.constant 0 : index
    %c0_6 = arith.constant 0 : index
    %17 = vector.load %arg3[%c0_5, %c0_6] : memref<1x128xf32, #tpu.memory_space<vmem>>, vector<1x128xf32>
    %18 = arith.addf %16, %17 : vector<1x128xf32>
    %19 = arith.mulf %13, %18 : vector<1x128xf32>
    %20 = arith.addf %15, %19 : vector<1x128xf32>
    %21 = math.tanh %20 : vector<1x128xf32>
    %22 = arith.subf %0, %21 : vector<1x128xf32>
    %23 = arith.mulf %14, %22 : vector<1x128xf32>
    %24 = arith.addf %21, %23 : vector<1x128xf32>
    %25 = arith.index_cast %c0_i32 : i32 to index
    %c0_7 = arith.constant 0 : index
    %26 = vector.load %arg5[%25, %c0_7] : memref<8x128xf32, #tpu.memory_space<vmem>>, vector<1x128xf32>
    tpu.vector_store %arg5[%25, %c0_7], %24 {strides = array<i32>} : memref<8x128xf32, #tpu.memory_space<vmem>>, vector<1x128xf32>,
    %c1_i32 = arith.constant 1 : i32
    %27 = arith.index_cast %c1_i32 : i32 to index
    %c0_8 = arith.constant 0 : index
    %28 = vector.load %arg1[%27, %c0_8] : memref<8x384xf32, #tpu.memory_space<vmem>>, vector<1x384xf32>
    %c0_9 = arith.constant 0 : index
    %c0_10 = arith.constant 0 : index
    %29 = vector.load %arg2[%c0_9, %c0_10] : memref<128x384xf32, #tpu.memory_space<vmem>>, vector<128x384xf32>
    %cst_11 = arith.constant dense<0.000000e+00> : vector<1x384xf32>
    %30 = tpu.matmul %24, %29, %cst_11 {dimension_numbers = #tpu.dot_dimension_numbers<[1], [0], [0], [1], [0, 0, 1, 1], [], []>} : vector<1x128xf32>, vector<128x384xf32>, vector<1x384xf32> -> vector<1x384xf32>
    %31 = vector.extract_strided_slice %28 {offsets = [0, 0], sizes = [1, 256], strides = [1, 1]} : vector<1x384xf32> to vector<1x256xf32>
    %32 = vector.extract_strided_slice %30 {offsets = [0, 0], sizes = [1, 256], strides = [1, 1]} : vector<1x384xf32> to vector<1x256xf32>
    %33 = arith.addf %31, %32 : vector<1x256xf32>
    %34 = arith.negf %33 : vector<1x256xf32>
    %35 = math.exp %34 : vector<1x256xf32>
    %cst_12 = arith.constant 1.000000e+00 : f32
    %36 = vector.broadcast %cst_12 : f32 to vector<1x256xf32>
    %37 = arith.addf %36, %35 : vector<1x256xf32>
    %38 = arith.divf %36, %37 : vector<1x256xf32>
    %39 = vector.extract_strided_slice %38 {offsets = [0, 0], sizes = [1, 128], strides = [1, 1]} : vector<1x256xf32> to vector<1x128xf32>
    %40 = vector.extract_strided_slice %38 {offsets = [0, 128], sizes = [1, 128], strides = [1, 1]} : vector<1x256xf32> to vector<1x128xf32>
    %41 = vector.extract_strided_slice %28 {offsets = [0, 256], sizes = [1, 128], strides = [1, 1]} : vector<1x384xf32> to vector<1x128xf32>
    %42 = vector.extract_strided_slice %30 {offsets = [0, 256], sizes = [1, 128], strides = [1, 1]} : vector<1x384xf32> to vector<1x128xf32>
    %c0_13 = arith.constant 0 : index
    %c0_14 = arith.constant 0 : index
    %43 = vector.load %arg3[%c0_13, %c0_14] : memref<1x128xf32, #tpu.memory_space<vmem>>, vector<1x128xf32>
    %44 = arith.addf %42, %43 : vector<1x128xf32>
    %45 = arith.mulf %39, %44 : vector<1x128xf32>
    %46 = arith.addf %41, %45 : vector<1x128xf32>
    %47 = math.tanh %46 : vector<1x128xf32>
    %48 = arith.subf %24, %47 : vector<1x128xf32>
    %49 = arith.mulf %40, %48 : vector<1x128xf32>
    %50 = arith.addf %47, %49 : vector<1x128xf32>
    %51 = arith.index_cast %c1_i32 : i32 to index
    %c0_15 = arith.constant 0 : index
    %52 = vector.load %arg5[%51, %c0_15] : memref<8x128xf32, #tpu.memory_space<vmem>>, vector<1x128xf32>
    tpu.vector_store %arg5[%51, %c0_15], %50 {strides = array<i32>} : memref<8x128xf32, #tpu.memory_space<vmem>>, vector<1x128xf32>,
    %c2_i32 = arith.constant 2 : i32
    %53 = arith.index_cast %c2_i32 : i32 to index
    %c0_16 = arith.constant 0 : index
    %54 = vector.load %arg1[%53, %c0_16] : memref<8x384xf32, #tpu.memory_space<vmem>>, vector<1x384xf32>
    %c0_17 = arith.constant 0 : index
    %c0_18 = arith.constant 0 : index
    %55 = vector.load %arg2[%c0_17, %c0_18] : memref<128x384xf32, #tpu.memory_space<vmem>>, vector<128x384xf32>
    %cst_19 = arith.constant dense<0.000000e+00> : vector<1x384xf32>
    %56 = tpu.matmul %50, %55, %cst_19 {dimension_numbers = #tpu.dot_dimension_numbers<[1], [0], [0], [1], [0, 0, 1, 1], [], []>} : vector<1x128xf32>, vector<128x384xf32>, vector<1x384xf32> -> vector<1x384xf32>
    %57 = vector.extract_strided_slice %54 {offsets = [0, 0], sizes = [1, 256], strides = [1, 1]} : vector<1x384xf32> to vector<1x256xf32>
    %58 = vector.extract_strided_slice %56 {offsets = [0, 0], sizes = [1, 256], strides = [1, 1]} : vector<1x384xf32> to vector<1x256xf32>
    %59 = arith.addf %57, %58 : vector<1x256xf32>
    %60 = arith.negf %59 : vector<1x256xf32>
    %61 = math.exp %60 : vector<1x256xf32>
    %cst_20 = arith.constant 1.000000e+00 : f32
    %62 = vector.broadcast %cst_20 : f32 to vector<1x256xf32>
    %63 = arith.addf %62, %61 : vector<1x256xf32>
    %64 = arith.divf %62, %63 : vector<1x256xf32>
    %65 = vector.extract_strided_slice %64 {offsets = [0, 0], sizes = [1, 128], strides = [1, 1]} : vector<1x256xf32> to vector<1x128xf32>
    %66 = vector.extract_strided_slice %64 {offsets = [0, 128], sizes = [1, 128], strides = [1, 1]} : vector<1x256xf32> to vector<1x128xf32>
    %67 = vector.extract_strided_slice %54 {offsets = [0, 256], sizes = [1, 128], strides = [1, 1]} : vector<1x384xf32> to vector<1x128xf32>
    %68 = vector.extract_strided_slice %56 {offsets = [0, 256], sizes = [1, 128], strides = [1, 1]} : vector<1x384xf32> to vector<1x128xf32>
    %c0_21 = arith.constant 0 : index
    %c0_22 = arith.constant 0 : index
    %69 = vector.load %arg3[%c0_21, %c0_22] : memref<1x128xf32, #tpu.memory_space<vmem>>, vector<1x128xf32>
    %70 = arith.addf %68, %69 : vector<1x128xf32>
    %71 = arith.mulf %65, %70 : vector<1x128xf32>
    %72 = arith.addf %67, %71 : vector<1x128xf32>
    %73 = math.tanh %72 : vector<1x128xf32>
    %74 = arith.subf %50, %73 : vector<1x128xf32>
    %75 = arith.mulf %66, %74 : vector<1x128xf32>
    %76 = arith.addf %73, %75 : vector<1x128xf32>
    %77 = arith.index_cast %c2_i32 : i32 to index
    %c0_23 = arith.constant 0 : index
    %78 = vector.load %arg5[%77, %c0_23] : memref<8x128xf32, #tpu.memory_space<vmem>>, vector<1x128xf32>
    tpu.vector_store %arg5[%77, %c0_23], %76 {strides = array<i32>} : memref<8x128xf32, #tpu.memory_space<vmem>>, vector<1x128xf32>,
    %c3_i32 = arith.constant 3 : i32
    %79 = arith.index_cast %c3_i32 : i32 to index
    %c0_24 = arith.constant 0 : index
    %80 = vector.load %arg1[%79, %c0_24] : memref<8x384xf32, #tpu.memory_space<vmem>>, vector<1x384xf32>
    %c0_25 = arith.constant 0 : index
    %c0_26 = arith.constant 0 : index
    %81 = vector.load %arg2[%c0_25, %c0_26] : memref<128x384xf32, #tpu.memory_space<vmem>>, vector<128x384xf32>
    %cst_27 = arith.constant dense<0.000000e+00> : vector<1x384xf32>
    %82 = tpu.matmul %76, %81, %cst_27 {dimension_numbers = #tpu.dot_dimension_numbers<[1], [0], [0], [1], [0, 0, 1, 1], [], []>} : vector<1x128xf32>, vector<128x384xf32>, vector<1x384xf32> -> vector<1x384xf32>
    %83 = vector.extract_strided_slice %80 {offsets = [0, 0], sizes = [1, 256], strides = [1, 1]} : vector<1x384xf32> to vector<1x256xf32>
    %84 = vector.extract_strided_slice %82 {offsets = [0, 0], sizes = [1, 256], strides = [1, 1]} : vector<1x384xf32> to vector<1x256xf32>
    %85 = arith.addf %83, %84 : vector<1x256xf32>
    %86 = arith.negf %85 : vector<1x256xf32>
    %87 = math.exp %86 : vector<1x256xf32>
    %cst_28 = arith.constant 1.000000e+00 : f32
    %88 = vector.broadcast %cst_28 : f32 to vector<1x256xf32>
    %89 = arith.addf %88, %87 : vector<1x256xf32>
    %90 = arith.divf %88, %89 : vector<1x256xf32>
    %91 = vector.extract_strided_slice %90 {offsets = [0, 0], sizes = [1, 128], strides = [1, 1]} : vector<1x256xf32> to vector<1x128xf32>
    %92 = vector.extract_strided_slice %90 {offsets = [0, 128], sizes = [1, 128], strides = [1, 1]} : vector<1x256xf32> to vector<1x128xf32>
    %93 = vector.extract_strided_slice %80 {offsets = [0, 256], sizes = [1, 128], strides = [1, 1]} : vector<1x384xf32> to vector<1x128xf32>
    %94 = vector.extract_strided_slice %82 {offsets = [0, 256], sizes = [1, 128], strides = [1, 1]} : vector<1x384xf32> to vector<1x128xf32>
    %c0_29 = arith.constant 0 : index
    %c0_30 = arith.constant 0 : index
    %95 = vector.load %arg3[%c0_29, %c0_30] : memref<1x128xf32, #tpu.memory_space<vmem>>, vector<1x128xf32>
    %96 = arith.addf %94, %95 : vector<1x128xf32>
    %97 = arith.mulf %91, %96 : vector<1x128xf32>
    %98 = arith.addf %93, %97 : vector<1x128xf32>
    %99 = math.tanh %98 : vector<1x128xf32>
    %100 = arith.subf %76, %99 : vector<1x128xf32>
    %101 = arith.mulf %92, %100 : vector<1x128xf32>
    %102 = arith.addf %99, %101 : vector<1x128xf32>
    %103 = arith.index_cast %c3_i32 : i32 to index
    %c0_31 = arith.constant 0 : index
    %104 = vector.load %arg5[%103, %c0_31] : memref<8x128xf32, #tpu.memory_space<vmem>>, vector<1x128xf32>
    tpu.vector_store %arg5[%103, %c0_31], %102 {strides = array<i32>} : memref<8x128xf32, #tpu.memory_space<vmem>>, vector<1x128xf32>,
    %c4_i32 = arith.constant 4 : i32
    %105 = arith.index_cast %c4_i32 : i32 to index
    %c0_32 = arith.constant 0 : index
    %106 = vector.load %arg1[%105, %c0_32] : memref<8x384xf32, #tpu.memory_space<vmem>>, vector<1x384xf32>
    %c0_33 = arith.constant 0 : index
    %c0_34 = arith.constant 0 : index
    %107 = vector.load %arg2[%c0_33, %c0_34] : memref<128x384xf32, #tpu.memory_space<vmem>>, vector<128x384xf32>
    %cst_35 = arith.constant dense<0.000000e+00> : vector<1x384xf32>
    %108 = tpu.matmul %102, %107, %cst_35 {dimension_numbers = #tpu.dot_dimension_numbers<[1], [0], [0], [1], [0, 0, 1, 1], [], []>} : vector<1x128xf32>, vector<128x384xf32>, vector<1x384xf32> -> vector<1x384xf32>
    %109 = vector.extract_strided_slice %106 {offsets = [0, 0], sizes = [1, 256], strides = [1, 1]} : vector<1x384xf32> to vector<1x256xf32>
    %110 = vector.extract_strided_slice %108 {offsets = [0, 0], sizes = [1, 256], strides = [1, 1]} : vector<1x384xf32> to vector<1x256xf32>
    %111 = arith.addf %109, %110 : vector<1x256xf32>
    %112 = arith.negf %111 : vector<1x256xf32>
    %113 = math.exp %112 : vector<1x256xf32>
    %cst_36 = arith.constant 1.000000e+00 : f32
    %114 = vector.broadcast %cst_36 : f32 to vector<1x256xf32>
    %115 = arith.addf %114, %113 : vector<1x256xf32>
    %116 = arith.divf %114, %115 : vector<1x256xf32>
    %117 = vector.extract_strided_slice %116 {offsets = [0, 0], sizes = [1, 128], strides = [1, 1]} : vector<1x256xf32> to vector<1x128xf32>
    %118 = vector.extract_strided_slice %116 {offsets = [0, 128], sizes = [1, 128], strides = [1, 1]} : vector<1x256xf32> to vector<1x128xf32>
    %119 = vector.extract_strided_slice %106 {offsets = [0, 256], sizes = [1, 128], strides = [1, 1]} : vector<1x384xf32> to vector<1x128xf32>
    %120 = vector.extract_strided_slice %108 {offsets = [0, 256], sizes = [1, 128], strides = [1, 1]} : vector<1x384xf32> to vector<1x128xf32>
    %c0_37 = arith.constant 0 : index
    %c0_38 = arith.constant 0 : index
    %121 = vector.load %arg3[%c0_37, %c0_38] : memref<1x128xf32, #tpu.memory_space<vmem>>, vector<1x128xf32>
    %122 = arith.addf %120, %121 : vector<1x128xf32>
    %123 = arith.mulf %117, %122 : vector<1x128xf32>
    %124 = arith.addf %119, %123 : vector<1x128xf32>
    %125 = math.tanh %124 : vector<1x128xf32>
    %126 = arith.subf %102, %125 : vector<1x128xf32>
    %127 = arith.mulf %118, %126 : vector<1x128xf32>
    %128 = arith.addf %125, %127 : vector<1x128xf32>
    %129 = arith.index_cast %c4_i32 : i32 to index
    %c0_39 = arith.constant 0 : index
    %130 = vector.load %arg5[%129, %c0_39] : memref<8x128xf32, #tpu.memory_space<vmem>>, vector<1x128xf32>
    tpu.vector_store %arg5[%129, %c0_39], %128 {strides = array<i32>} : memref<8x128xf32, #tpu.memory_space<vmem>>, vector<1x128xf32>,
    %c5_i32 = arith.constant 5 : i32
    %131 = arith.index_cast %c5_i32 : i32 to index
    %c0_40 = arith.constant 0 : index
    %132 = vector.load %arg1[%131, %c0_40] : memref<8x384xf32, #tpu.memory_space<vmem>>, vector<1x384xf32>
    %c0_41 = arith.constant 0 : index
    %c0_42 = arith.constant 0 : index
    %133 = vector.load %arg2[%c0_41, %c0_42] : memref<128x384xf32, #tpu.memory_space<vmem>>, vector<128x384xf32>
    %cst_43 = arith.constant dense<0.000000e+00> : vector<1x384xf32>
    %134 = tpu.matmul %128, %133, %cst_43 {dimension_numbers = #tpu.dot_dimension_numbers<[1], [0], [0], [1], [0, 0, 1, 1], [], []>} : vector<1x128xf32>, vector<128x384xf32>, vector<1x384xf32> -> vector<1x384xf32>
    %135 = vector.extract_strided_slice %132 {offsets = [0, 0], sizes = [1, 256], strides = [1, 1]} : vector<1x384xf32> to vector<1x256xf32>
    %136 = vector.extract_strided_slice %134 {offsets = [0, 0], sizes = [1, 256], strides = [1, 1]} : vector<1x384xf32> to vector<1x256xf32>
    %137 = arith.addf %135, %136 : vector<1x256xf32>
    %138 = arith.negf %137 : vector<1x256xf32>
    %139 = math.exp %138 : vector<1x256xf32>
    %cst_44 = arith.constant 1.000000e+00 : f32
    %140 = vector.broadcast %cst_44 : f32 to vector<1x256xf32>
    %141 = arith.addf %140, %139 : vector<1x256xf32>
    %142 = arith.divf %140, %141 : vector<1x256xf32>
    %143 = vector.extract_strided_slice %142 {offsets = [0, 0], sizes = [1, 128], strides = [1, 1]} : vector<1x256xf32> to vector<1x128xf32>
    %144 = vector.extract_strided_slice %142 {offsets = [0, 128], sizes = [1, 128], strides = [1, 1]} : vector<1x256xf32> to vector<1x128xf32>
    %145 = vector.extract_strided_slice %132 {offsets = [0, 256], sizes = [1, 128], strides = [1, 1]} : vector<1x384xf32> to vector<1x128xf32>
    %146 = vector.extract_strided_slice %134 {offsets = [0, 256], sizes = [1, 128], strides = [1, 1]} : vector<1x384xf32> to vector<1x128xf32>
    %c0_45 = arith.constant 0 : index
    %c0_46 = arith.constant 0 : index
    %147 = vector.load %arg3[%c0_45, %c0_46] : memref<1x128xf32, #tpu.memory_space<vmem>>, vector<1x128xf32>
    %148 = arith.addf %146, %147 : vector<1x128xf32>
    %149 = arith.mulf %143, %148 : vector<1x128xf32>
    %150 = arith.addf %145, %149 : vector<1x128xf32>
    %151 = math.tanh %150 : vector<1x128xf32>
    %152 = arith.subf %128, %151 : vector<1x128xf32>
    %153 = arith.mulf %144, %152 : vector<1x128xf32>
    %154 = arith.addf %151, %153 : vector<1x128xf32>
    %155 = arith.index_cast %c5_i32 : i32 to index
    %c0_47 = arith.constant 0 : index
    %156 = vector.load %arg5[%155, %c0_47] : memref<8x128xf32, #tpu.memory_space<vmem>>, vector<1x128xf32>
    tpu.vector_store %arg5[%155, %c0_47], %154 {strides = array<i32>} : memref<8x128xf32, #tpu.memory_space<vmem>>, vector<1x128xf32>,
    %c6_i32 = arith.constant 6 : i32
    %157 = arith.index_cast %c6_i32 : i32 to index
    %c0_48 = arith.constant 0 : index
    %158 = vector.load %arg1[%157, %c0_48] : memref<8x384xf32, #tpu.memory_space<vmem>>, vector<1x384xf32>
    %c0_49 = arith.constant 0 : index
    %c0_50 = arith.constant 0 : index
    %159 = vector.load %arg2[%c0_49, %c0_50] : memref<128x384xf32, #tpu.memory_space<vmem>>, vector<128x384xf32>
    %cst_51 = arith.constant dense<0.000000e+00> : vector<1x384xf32>
    %160 = tpu.matmul %154, %159, %cst_51 {dimension_numbers = #tpu.dot_dimension_numbers<[1], [0], [0], [1], [0, 0, 1, 1], [], []>} : vector<1x128xf32>, vector<128x384xf32>, vector<1x384xf32> -> vector<1x384xf32>
    %161 = vector.extract_strided_slice %158 {offsets = [0, 0], sizes = [1, 256], strides = [1, 1]} : vector<1x384xf32> to vector<1x256xf32>
    %162 = vector.extract_strided_slice %160 {offsets = [0, 0], sizes = [1, 256], strides = [1, 1]} : vector<1x384xf32> to vector<1x256xf32>
    %163 = arith.addf %161, %162 : vector<1x256xf32>
    %164 = arith.negf %163 : vector<1x256xf32>
    %165 = math.exp %164 : vector<1x256xf32>
    %cst_52 = arith.constant 1.000000e+00 : f32
    %166 = vector.broadcast %cst_52 : f32 to vector<1x256xf32>
    %167 = arith.addf %166, %165 : vector<1x256xf32>
    %168 = arith.divf %166, %167 : vector<1x256xf32>
    %169 = vector.extract_strided_slice %168 {offsets = [0, 0], sizes = [1, 128], strides = [1, 1]} : vector<1x256xf32> to vector<1x128xf32>
    %170 = vector.extract_strided_slice %168 {offsets = [0, 128], sizes = [1, 128], strides = [1, 1]} : vector<1x256xf32> to vector<1x128xf32>
    %171 = vector.extract_strided_slice %158 {offsets = [0, 256], sizes = [1, 128], strides = [1, 1]} : vector<1x384xf32> to vector<1x128xf32>
    %172 = vector.extract_strided_slice %160 {offsets = [0, 256], sizes = [1, 128], strides = [1, 1]} : vector<1x384xf32> to vector<1x128xf32>
    %c0_53 = arith.constant 0 : index
    %c0_54 = arith.constant 0 : index
    %173 = vector.load %arg3[%c0_53, %c0_54] : memref<1x128xf32, #tpu.memory_space<vmem>>, vector<1x128xf32>
    %174 = arith.addf %172, %173 : vector<1x128xf32>
    %175 = arith.mulf %169, %174 : vector<1x128xf32>
    %176 = arith.addf %171, %175 : vector<1x128xf32>
    %177 = math.tanh %176 : vector<1x128xf32>
    %178 = arith.subf %154, %177 : vector<1x128xf32>
    %179 = arith.mulf %170, %178 : vector<1x128xf32>
    %180 = arith.addf %177, %179 : vector<1x128xf32>
    %181 = arith.index_cast %c6_i32 : i32 to index
    %c0_55 = arith.constant 0 : index
    %182 = vector.load %arg5[%181, %c0_55] : memref<8x128xf32, #tpu.memory_space<vmem>>, vector<1x128xf32>
    tpu.vector_store %arg5[%181, %c0_55], %180 {strides = array<i32>} : memref<8x128xf32, #tpu.memory_space<vmem>>, vector<1x128xf32>,
    %c7_i32 = arith.constant 7 : i32
    %183 = arith.index_cast %c7_i32 : i32 to index
    %c0_56 = arith.constant 0 : index
    %184 = vector.load %arg1[%183, %c0_56] : memref<8x384xf32, #tpu.memory_space<vmem>>, vector<1x384xf32>
    %c0_57 = arith.constant 0 : index
    %c0_58 = arith.constant 0 : index
    %185 = vector.load %arg2[%c0_57, %c0_58] : memref<128x384xf32, #tpu.memory_space<vmem>>, vector<128x384xf32>
    %cst_59 = arith.constant dense<0.000000e+00> : vector<1x384xf32>
    %186 = tpu.matmul %180, %185, %cst_59 {dimension_numbers = #tpu.dot_dimension_numbers<[1], [0], [0], [1], [0, 0, 1, 1], [], []>} : vector<1x128xf32>, vector<128x384xf32>, vector<1x384xf32> -> vector<1x384xf32>
    %187 = vector.extract_strided_slice %184 {offsets = [0, 0], sizes = [1, 256], strides = [1, 1]} : vector<1x384xf32> to vector<1x256xf32>
    %188 = vector.extract_strided_slice %186 {offsets = [0, 0], sizes = [1, 256], strides = [1, 1]} : vector<1x384xf32> to vector<1x256xf32>
    %189 = arith.addf %187, %188 : vector<1x256xf32>
    %190 = arith.negf %189 : vector<1x256xf32>
    %191 = math.exp %190 : vector<1x256xf32>
    %cst_60 = arith.constant 1.000000e+00 : f32
    %192 = vector.broadcast %cst_60 : f32 to vector<1x256xf32>
    %193 = arith.addf %192, %191 : vector<1x256xf32>
    %194 = arith.divf %192, %193 : vector<1x256xf32>
    %195 = vector.extract_strided_slice %194 {offsets = [0, 0], sizes = [1, 128], strides = [1, 1]} : vector<1x256xf32> to vector<1x128xf32>
    %196 = vector.extract_strided_slice %194 {offsets = [0, 128], sizes = [1, 128], strides = [1, 1]} : vector<1x256xf32> to vector<1x128xf32>
    %197 = vector.extract_strided_slice %184 {offsets = [0, 256], sizes = [1, 128], strides = [1, 1]} : vector<1x384xf32> to vector<1x128xf32>
    %198 = vector.extract_strided_slice %186 {offsets = [0, 256], sizes = [1, 128], strides = [1, 1]} : vector<1x384xf32> to vector<1x128xf32>
    %c0_61 = arith.constant 0 : index
    %c0_62 = arith.constant 0 : index
    %199 = vector.load %arg3[%c0_61, %c0_62] : memref<1x128xf32, #tpu.memory_space<vmem>>, vector<1x128xf32>
    %200 = arith.addf %198, %199 : vector<1x128xf32>
    %201 = arith.mulf %195, %200 : vector<1x128xf32>
    %202 = arith.addf %197, %201 : vector<1x128xf32>
    %203 = math.tanh %202 : vector<1x128xf32>
    %204 = arith.subf %180, %203 : vector<1x128xf32>
    %205 = arith.mulf %196, %204 : vector<1x128xf32>
    %206 = arith.addf %203, %205 : vector<1x128xf32>
    %207 = arith.index_cast %c7_i32 : i32 to index
    %c0_63 = arith.constant 0 : index
    %208 = vector.load %arg5[%207, %c0_63] : memref<8x128xf32, #tpu.memory_space<vmem>>, vector<1x128xf32>
    tpu.vector_store %arg5[%207, %c0_63], %206 {strides = array<i32>} : memref<8x128xf32, #tpu.memory_space<vmem>>, vector<1x128xf32>,
    %c8_i32 = arith.constant 8 : i32
    return
  }
  func.func @transform_0(%arg0: i32) -> (i32, i32) {
    %c0_i32 = arith.constant 0 : i32
    %c0_i32_0 = arith.constant 0 : i32
    %c0_i32_1 = arith.constant 0 : i32
    return %c0_i32, %c0_i32_0 : i32, i32
  }
  func.func @transform_1(%arg0: i32) -> (i32, i32) {
    %c0_i32 = arith.constant 0 : i32
    %c0_i32_0 = arith.constant 0 : i32
    %c0_i32_1 = arith.constant 0 : i32
    return %c0_i32, %c0_i32_0 : i32, i32
  }
  func.func @transform_2(%arg0: i32) -> (i32, i32) {
    %c0_i32 = arith.constant 0 : i32
    %c0_i32_0 = arith.constant 0 : i32
    %c0_i32_1 = arith.constant 0 : i32
    return %c0_i32, %c0_i32_0 : i32, i32
  }
  func.func @transform_3(%arg0: i32) -> (i32, i32) {
    %c0_i32 = arith.constant 0 : i32
    %c0_i32_0 = arith.constant 0 : i32
    %c0_i32_1 = arith.constant 0 : i32
    return %c0_i32, %c0_i32_0 : i32, i32
  }
  func.func @transform_4(%arg0: i32) -> (i32, i32) {
    %c0_i32 = arith.constant 0 : i32
    %c0_i32_0 = arith.constant 0 : i32
    %c0_i32_1 = arith.constant 0 : i32
    return %c0_i32, %c0_i32_0 : i32, i32
  }
}

</mosaic_0001>

<bundles_post_ra>
// kernel: tpu_custom_call.1
= control target key start
LH: loop header
LB: loop body
LE: loop exit
PB: predicated region body
PF: predicated region fallthrough
CT: control target
= control target key end

     0   :  { %9 = vsyncpa [#allocation3], 0  ;;  %s2080_s0 = inlined_call_operand.hbm [shape: f32[8,384], index: 0, kind: input, shape index: {}]   ;;  %s2081_s1 = inlined_call_operand.hbm [shape: f32[128,384], index: 1, kind: input, shape index: {}]   ;;  %s2082_s2 = inlined_call_operand.vmem [shape: f32[1,128], index: 2, kind: input, shape index: {}]   ;;  %s2083_s3 = inlined_call_operand.vmem [shape: f32[1,128], index: 3, kind: input, shape index: {}]   ;;  %s2084_s4 = inlined_call_operand.hbm [shape: f32[8,128], index: 4, kind: output, shape index: {}]  }
   0x1   :  { %10 = vsyncpa [#allocation6], 0 }
   0x2   :  { %11 = vsyncpa [#allocation4], 0  ;;  %s17_s17 = sshll.u32 %s2080_s0, 4  ;;  %s1406_s18 = smov [#allocation2]   ;;  %s18_s17 = int_to_ptr.hbm [resolvable:$true] %s17_s17 }
   0x3   :  { %s19_s19 = sshll.u32 %s1406_s18, 4  ;;  %s27_s22 = sshll.u32 %s2081_s1, 4  ;;  %s20_s19 = int_to_ptr.vmem [resolvable:$true] %s19_s19  ;;  %s28_s22 = int_to_ptr.hbm [resolvable:$true] %s27_s22 }
   0x4   :  { %22 = dma.hbm_to_vmem [thread:$0]  %s18_s17, 384, %s20_s19, [#allocation3]  }
   0x5   :  { %s1407_s23 = smov [#allocation5]   ;;  %s1408_s25 = smov 384  }
   0x6   :  { %s29_s24 = sshll.u32 %s1407_s23, 4  ;;  %s1409_s26 = smov 24   ;;  %s30_s24 = int_to_ptr.vmem [resolvable:$true] %s29_s24 }
   0x7   :  { %35 = dma.hbm_to_vmem [thread:$0]  %s28_s22, 6144, %s30_s24, [#allocation6], %s1408_s25, %s1408_s25, %s1409_s26  }
   0x8   :  { %1400 = dma.done.wait [#allocation3], 384  }
   0x9   :  { %1401 = vsyncadd [#allocation3], 4294966912 }
   0xa   :  { %1402 = dma.done.wait [#allocation6], 6144  }
   0xb   :  { %1403 = vsyncadd [#allocation6], 4294961152  ;;  %v1442_v0 = vld [vmem:[#allocation5 + $0x170] sm:$0xff]  ;;  %v1444_v1 = vld [vmem:[#allocation5 + $0x168] sm:$0xff]  ;;  %vm161_vm0 = vcmask 1040384   ;;  %s1410_s16 = smov [#allocation7]  }
   0xc   :  { %v1446_v2 = vld [vmem:[#allocation5 + $0x158] sm:$0xff]  ;;  %118 = vmatpush.msra.mxu1 %v1442_v0  ;;  %98 = vmatpush.msra.mxu0 %v1444_v1  ;;  %v1450_v3 = vld [vmem:[#allocation5 + $0x150] sm:$0xff]  ;;  %v1452_v4 = vld [vmem:[#allocation5 + $0x140] sm:$0xff]  ;;  %s1254_s17 = sshll.u32 %s1410_s16, 4  ;;  %s1255_s17 = int_to_ptr.vmem [resolvable:$true] %s1254_s17 }
   0xd   :  { %v1454_v5 = vld [vmem:[#allocation5 + $0x138] sm:$0xff]  ;;  %249 = vmatpush.msra.mxu3 %v1444_v1  ;;  %v1459_v6 = vld [vmem:[#allocation5 + $0x128] sm:$0xff]  ;;  %v1461_v7 = vld [vmem:[#allocation5 + $0x120] sm:$0xff] }
   0xe   :  { %119 = vmatpush.msra.mxu1 %v1446_v2  ;;  %99 = vmatpush.msra.mxu0 %v1450_v3  ;;  %v1466_v8 = vld [vmem:[#allocation5 + $0x110] sm:$0xff]  ;;  %v1468_v9 = vld [vmem:[#allocation5 + $0x108] sm:$0xff]  ;;  %v1473_v10 = vld [vmem:[#allocation5 + $0xf8] sm:$0xff] }
   0xf   :  { %250 = vmatpush.msra.mxu3 %v1450_v3  ;;  %v1475_v11 = vld [vmem:[#allocation5 + $0xf0] sm:$0xff]  ;;  %v1477_v12 = vld [vmem:[#allocation5 + $0x178] sm:$0xff]  ;;  %v1482_v13 = vld [vmem:[#allocation5 + $0x160] sm:$0xff] }
  0x10   :  { %120 = vmatpush.msra.mxu1 %v1452_v4  ;;  %100 = vmatpush.msra.mxu0 %v1454_v5  ;;  %v1484_v14 = vld [vmem:[#allocation5 + $0xe0] sm:$0xff]  ;;  %v1486_v15 = vld [vmem:[#allocation5 + $0xd8] sm:$0xff]  ;;  %v1492_v16 = vld [vmem:[#allocation5 + $0x148] sm:$0xff] }
  0x11   :  { %251 = vmatpush.msra.mxu3 %v1454_v5  ;;  %138 = vmatpush.msra.mxu2 %v1477_v12  ;;  %v1494_v17 = vld [vmem:[#allocation5 + $0xc8] sm:$0xff]  ;;  %v1496_v18 = vld [vmem:[#allocation5 + $0xc0] sm:$0xff]  ;;  %v1502_v19 = vld [vmem:[#allocation5 + $0x130] sm:$0xff] }
  0x12   :  { %121 = vmatpush.msra.mxu1 %v1459_v6  ;;  %101 = vmatpush.msra.mxu0 %v1461_v7  ;;  %v1504_v20 = vld [vmem:[#allocation5 + $0xb0] sm:$0xff]  ;;  %v1506_v21 = vld [vmem:[#allocation5 + $0xa8] sm:$0xff]  ;;  %v1512_v22 = vld [vmem:[#allocation5 + $0x118] sm:$0xff] }
  0x13   :  { %252 = vmatpush.msra.mxu3 %v1461_v7  ;;  %139 = vmatpush.msra.mxu2 %v1482_v13  ;;  %v1514_v23 = vld [vmem:[#allocation5 + $0x98] sm:$0xff]  ;;  %v1516_v24 = vld [vmem:[#allocation5 + $0x90] sm:$0xff]  ;;  %v1522_v25 = vld [vmem:[#allocation5 + $0x100] sm:$0xff] }
  0x14   :  { %122 = vmatpush.msra.mxu1 %v1466_v8  ;;  %102 = vmatpush.msra.mxu0 %v1468_v9  ;;  %v1524_v26 = vld [vmem:[#allocation5 + $0x80] sm:$0xff]  ;;  %v1526_v27 = vld [vmem:[#allocation5 + $0x78] sm:$0xff]  ;;  %v1532_v28 = vld [vmem:[#allocation5 + $0xe8] sm:$0xff] }
  0x15   :  { %253 = vmatpush.msra.mxu3 %v1468_v9  ;;  %140 = vmatpush.msra.mxu2 %v1492_v16  ;;  %v1534_v29 = vld [vmem:[#allocation5 + $0x68] sm:$0xff]  ;;  %v1536_v30 = vld [vmem:[#allocation5 + $0x60] sm:$0xff]  ;;  %v1542_v31 = vld [vmem:[#allocation5 + $0xd0] sm:$0xff] }
  0x16   :  { %123 = vmatpush.msra.mxu1 %v1473_v10  ;;  %103 = vmatpush.msra.mxu0 %v1475_v11  ;;  %v1544_v32 = vld [vmem:[#allocation5 + $0x50] sm:$0xff]  ;;  %v1546_v33 = vld [vmem:[#allocation5 + $0x48] sm:$0xff]  ;;  %v1552_v34 = vld [vmem:[#allocation5 + $0xb8] sm:$0xff] }
  0x17   :  { %254 = vmatpush.msra.mxu3 %v1475_v11  ;;  %141 = vmatpush.msra.mxu2 %v1502_v19  ;;  %v1554_v35 = vld [vmem:[#allocation5 + $0x38] sm:$0xff]  ;;  %v1556_v36 = vld [vmem:[#allocation5 + $0x30] sm:$0xff]  ;;  %v1562_v37 = vld [vmem:[#allocation5 + $0xa0] sm:$0xff] }
  0x18   :  { %124 = vmatpush.msra.mxu1 %v1484_v14  ;;  %104 = vmatpush.msra.mxu0 %v1486_v15  ;;  %v1564_v38 = vld [vmem:[#allocation5 + $0x20] sm:$0xff]  ;;  %v1566_v39 = vld [vmem:[#allocation5 + $0x18] sm:$0xff]  ;;  %v1572_v40 = vld [vmem:[#allocation5 + $0x88] sm:$0xff] }
  0x19   :  { %255 = vmatpush.msra.mxu3 %v1486_v15  ;;  %142 = vmatpush.msra.mxu2 %v1512_v22  ;;  %v1574_v41 = vld [vmem:[#allocation5 + $0x8] sm:$0xff]  ;;  %v1576_v42 = vld [vmem:[#allocation5] sm:$0xff]  ;;  %v1588_v44 = vld [vmem:[#allocation5 + $0x70] sm:$0xff] }
  0x1a   :  { %125 = vmatpush.msra.mxu1 %v1494_v17  ;;  %105 = vmatpush.msra.mxu0 %v1496_v18  ;;  %v1585_v43 = vld [vmem:[%s2083_s3] sm:$0x1]  ;;  %v1595_v45 = vld [vmem:[#allocation5 + $0x58] sm:$0xff]  ;;  %v1599_v46 = vld [vmem:[#allocation5 + $0x40] sm:$0xff] }
  0x1b   :  { %256 = vmatpush.msra.mxu3 %v1496_v18  ;;  %143 = vmatpush.msra.mxu2 %v1522_v25  ;;  %v1605_v47 = vld [vmem:[#allocation5 + $0x28] sm:$0xff]  ;;  %v1611_v48 = vld [vmem:[#allocation5 + $0x10] sm:$0xff] }
  0x1c   :  { %126 = vmatpush.msra.mxu1 %v1504_v20  ;;  %106 = vmatpush.msra.mxu0 %v1506_v21  ;;  %v49_v52 = vld [vmem:[#allocation2] ss:$8 sm:$0x7] }
  0x1d   :  { %257 = vmatpush.msra.mxu3 %v1506_v21  ;;  %144 = vmatpush.msra.mxu2 %v1532_v28  ;;  %v184_v63 = vld [vmem:[%s2082_s2] sm:$0x1] }
  0x1e   :  { %127 = vmatpush.msra.mxu1 %v1514_v23  ;;  %107 = vmatpush.msra.mxu0 %v1516_v24 }
  0x1f   :  { %258 = vmatpush.msra.mxu3 %v1516_v24  ;;  %145 = vmatpush.msra.mxu2 %v1542_v31 }
  0x20   :  { %128 = vmatpush.msra.mxu1 %v1524_v26  ;;  %108 = vmatpush.msra.mxu0 %v1526_v27 }
  0x21   :  { %259 = vmatpush.msra.mxu3 %v1526_v27  ;;  %146 = vmatpush.msra.mxu2 %v1552_v34 }
  0x22   :  { %129 = vmatpush.msra.mxu1 %v1534_v29  ;;  %109 = vmatpush.msra.mxu0 %v1536_v30 }
  0x23   :  { %260 = vmatpush.msra.mxu3 %v1536_v30  ;;  %147 = vmatpush.msra.mxu2 %v1562_v37 }
  0x24   :  { %130 = vmatpush.msra.mxu1 %v1544_v32  ;;  %110 = vmatpush.msra.mxu0 %v1546_v33 }
  0x25   :  { %261 = vmatpush.msra.mxu3 %v1546_v33  ;;  %148 = vmatpush.msra.mxu2 %v1572_v40 }
  0x26   :  { %131 = vmatpush.msra.mxu1 %v1554_v35  ;;  %111 = vmatpush.msra.mxu0 %v1556_v36 }
  0x27   :  { %262 = vmatpush.msra.mxu3 %v1556_v36  ;;  %149 = vmatpush.msra.mxu2 %v1588_v44 }
  0x28   :  { %132 = vmatpush.msra.mxu1 %v1564_v38  ;;  %112 = vmatpush.msra.mxu0 %v1566_v39 }
  0x29   :  { %263 = vmatpush.msra.mxu3 %v1566_v39  ;;  %150 = vmatpush.msra.mxu2 %v1595_v45 }
  0x2a   :  { %133 = vmatpush.msra.mxu1 %v1574_v41  ;;  %113 = vmatpush.msra.mxu0 %v1576_v42 }
  0x2b   :  { %134 = vmatmul.f32.vlgmr.msra.gmra.mxu1 %v1585_v43  ;;  %114 = vmatmul.f32.vlgmr.msra.gmra.mxu0 %v1585_v43 }
  0x2c   :  { %269 = vmatpush.msrb.mxu0 %v1442_v0  ;;  %289 = vmatpush.msrb.mxu1 %v1477_v12 }
  0x2d   :  { %264 = vmatpush.msra.mxu3 %v1576_v42  ;;  %151 = vmatpush.msra.mxu2 %v1599_v46 }
  0x2e   :  { %270 = vmatpush.msrb.mxu0 %v1446_v2  ;;  %290 = vmatpush.msrb.mxu1 %v1482_v13 }
  0x2f   :  { %419 = vmatpush.msrb.mxu3 %v1442_v0  ;;  %152 = vmatpush.msra.mxu2 %v1605_v47 }
  0x30   :  { %271 = vmatpush.msrb.mxu0 %v1452_v4  ;;  %291 = vmatpush.msrb.mxu1 %v1492_v16 }
  0x31   :  { %420 = vmatpush.msrb.mxu3 %v1446_v2  ;;  %153 = vmatpush.msra.mxu2 %v1611_v48 }
  0x32   :  { %272 = vmatpush.msrb.mxu0 %v1459_v6  ;;  %292 = vmatpush.msrb.mxu1 %v1502_v19 }
  0x33   :  { %421 = vmatpush.msrb.mxu3 %v1452_v4  ;;  %154 = vmatmul.f32.vlgmr.msra.gmra.mxu2 %v1585_v43 }
  0x34   :  { %273 = vmatpush.msrb.mxu0 %v1466_v8  ;;  %293 = vmatpush.msrb.mxu1 %v1512_v22 }
  0x35   :  { %399 = vmatpush.msrb.mxu2 %v1444_v1  ;;  %422 = vmatpush.msrb.mxu3 %v1459_v6 }
  0x36   :  { %274 = vmatpush.msrb.mxu0 %v1473_v10  ;;  %294 = vmatpush.msrb.mxu1 %v1522_v25 }
  0x37   :  { %400 = vmatpush.msrb.mxu2 %v1450_v3  ;;  %423 = vmatpush.msrb.mxu3 %v1466_v8 }
  0x38   :  { %275 = vmatpush.msrb.mxu0 %v1484_v14  ;;  %295 = vmatpush.msrb.mxu1 %v1532_v28 }
  0x39   :  { %401 = vmatpush.msrb.mxu2 %v1454_v5  ;;  %424 = vmatpush.msrb.mxu3 %v1473_v10 }
  0x3a   :  { %276 = vmatpush.msrb.mxu0 %v1494_v17  ;;  %296 = vmatpush.msrb.mxu1 %v1542_v31 }
  0x3b   :  { %402 = vmatpush.msrb.mxu2 %v1461_v7  ;;  %425 = vmatpush.msrb.mxu3 %v1484_v14 }
  0x3c   :  { %277 = vmatpush.msrb.mxu0 %v1504_v20  ;;  %297 = vmatpush.msrb.mxu1 %v1552_v34 }
  0x3d   :  { %403 = vmatpush.msrb.mxu2 %v1468_v9  ;;  %426 = vmatpush.msrb.mxu3 %v1494_v17 }
  0x3e   :  { %278 = vmatpush.msrb.mxu0 %v1514_v23  ;;  %298 = vmatpush.msrb.mxu1 %v1562_v37 }
  0x3f   :  { %404 = vmatpush.msrb.mxu2 %v1475_v11  ;;  %427 = vmatpush.msrb.mxu3 %v1504_v20 }
  0x40   :  { %279 = vmatpush.msrb.mxu0 %v1524_v26  ;;  %299 = vmatpush.msrb.mxu1 %v1572_v40 }
  0x41   :  { %405 = vmatpush.msrb.mxu2 %v1486_v15  ;;  %428 = vmatpush.msrb.mxu3 %v1514_v23 }
  0x42   :  { %280 = vmatpush.msrb.mxu0 %v1534_v29  ;;  %300 = vmatpush.msrb.mxu1 %v1588_v44 }
  0x43   :  { %406 = vmatpush.msrb.mxu2 %v1496_v18  ;;  %429 = vmatpush.msrb.mxu3 %v1524_v26 }
  0x44   :  { %281 = vmatpush.msrb.mxu0 %v1544_v32  ;;  %301 = vmatpush.msrb.mxu1 %v1595_v45 }
  0x45   :  { %407 = vmatpush.msrb.mxu2 %v1506_v21  ;;  %430 = vmatpush.msrb.mxu3 %v1534_v29 }
  0x46   :  { %282 = vmatpush.msrb.mxu0 %v1554_v35  ;;  %302 = vmatpush.msrb.mxu1 %v1599_v46 }
  0x47   :  { %408 = vmatpush.msrb.mxu2 %v1516_v24  ;;  %431 = vmatpush.msrb.mxu3 %v1544_v32 }
  0x48   :  { %283 = vmatpush.msrb.mxu0 %v1564_v38  ;;  %303 = vmatpush.msrb.mxu1 %v1605_v47 }
  0x49   :  { %409 = vmatpush.msrb.mxu2 %v1526_v27  ;;  %432 = vmatpush.msrb.mxu3 %v1554_v35 }
  0x4a   :  { %284 = vmatpush.msrb.mxu0 %v1574_v41  ;;  %304 = vmatpush.msrb.mxu1 %v1611_v48 }
  0x4b   :  { %410 = vmatpush.msrb.mxu2 %v1536_v30  ;;  %433 = vmatpush.msrb.mxu3 %v1564_v38 }
  0x4c   :  { %439 = vmatpush.msra.mxu0 %v1477_v12  ;;  %549 = vmatpush.msra.mxu1 %v1444_v1 }
  0x4d   :  { %411 = vmatpush.msrb.mxu2 %v1546_v33  ;;  %434 = vmatpush.msrb.mxu3 %v1574_v41 }
  0x4e   :  { %440 = vmatpush.msra.mxu0 %v1482_v13  ;;  %550 = vmatpush.msra.mxu1 %v1450_v3 }
  0x4f   :  { %412 = vmatpush.msrb.mxu2 %v1556_v36 }
  0x50   :  { %441 = vmatpush.msra.mxu0 %v1492_v16  ;;  %551 = vmatpush.msra.mxu1 %v1454_v5  ;;  %v188_v5 = vrot.slane %v49_v52, 2 }
  0x51   :  { %413 = vmatpush.msrb.mxu2 %v1566_v39 }
  0x52   :  { %442 = vmatpush.msra.mxu0 %v1502_v19  ;;  %552 = vmatpush.msra.mxu1 %v1461_v7 }
  0x53   :  { %414 = vmatpush.msrb.mxu2 %v1576_v42 }
  0x54   :  { %443 = vmatpush.msra.mxu0 %v1512_v22  ;;  %553 = vmatpush.msra.mxu1 %v1468_v9 }
  0x55   :  { %569 = vmatpush.msra.mxu2 %v1442_v0 }
  0x56   :  { %444 = vmatpush.msra.mxu0 %v1522_v25  ;;  %554 = vmatpush.msra.mxu1 %v1475_v11 }
  0x57   :  { %570 = vmatpush.msra.mxu2 %v1446_v2 }
  0x58   :  { %445 = vmatpush.msra.mxu0 %v1532_v28  ;;  %555 = vmatpush.msra.mxu1 %v1486_v15 }
  0x59   :  { %571 = vmatpush.msra.mxu2 %v1452_v4 }
  0x5a   :  { %446 = vmatpush.msra.mxu0 %v1542_v31  ;;  %556 = vmatpush.msra.mxu1 %v1496_v18 }
  0x5b   :  { %572 = vmatpush.msra.mxu2 %v1459_v6 }
  0x5c   :  { %447 = vmatpush.msra.mxu0 %v1552_v34  ;;  %557 = vmatpush.msra.mxu1 %v1506_v21  ;;  %v200_v21 = vld [vmem:[#allocation2 + $0x1] ss:$8 sm:$0x7] }
  0x5d   :  { %573 = vmatpush.msra.mxu2 %v1466_v8 }
  0x5e   :  { %448 = vmatpush.msra.mxu0 %v1562_v37  ;;  %558 = vmatpush.msra.mxu1 %v1516_v24 }
  0x5f   :  { %574 = vmatpush.msra.mxu2 %v1473_v10 }
  0x60   :  { %449 = vmatpush.msra.mxu0 %v1572_v40  ;;  %559 = vmatpush.msra.mxu1 %v1526_v27 }
  0x61   :  { %575 = vmatpush.msra.mxu2 %v1484_v14 }
  0x62   :  { %450 = vmatpush.msra.mxu0 %v1588_v44  ;;  %560 = vmatpush.msra.mxu1 %v1536_v30 }
  0x63   :  { %576 = vmatpush.msra.mxu2 %v1494_v17 }
  0x64   :  { %451 = vmatpush.msra.mxu0 %v1595_v45  ;;  %561 = vmatpush.msra.mxu1 %v1546_v33 }
  0x65   :  { %577 = vmatpush.msra.mxu2 %v1504_v20 }
  0x66   :  { %452 = vmatpush.msra.mxu0 %v1599_v46  ;;  %562 = vmatpush.msra.mxu1 %v1556_v36 }
  0x67   :  { %578 = vmatpush.msra.mxu2 %v1514_v23 }
  0x68   :  { %453 = vmatpush.msra.mxu0 %v1605_v47  ;;  %563 = vmatpush.msra.mxu1 %v1566_v39 }
  0x69   :  { %579 = vmatpush.msra.mxu2 %v1524_v26 }
  0x6a   :  { %454 = vmatpush.msra.mxu0 %v1611_v48  ;;  %564 = vmatpush.msra.mxu1 %v1576_v42 }
  0x6b   :  { %580 = vmatpush.msra.mxu2 %v1534_v29 }
  0x6d   :  { %581 = vmatpush.msra.mxu2 %v1544_v32 }
  0x6f   :  { %582 = vmatpush.msra.mxu2 %v1554_v35 }
  0x71   :  { %583 = vmatpush.msra.mxu2 %v1564_v38 }
  0x73   :  { %584 = vmatpush.msra.mxu2 %v1574_v41  ;;  %v334_v41 = vld [vmem:[%s2082_s2] sm:$0x1] }
  0xa8   :  { %v135_v49 = vpop.f32.mrf.mxu1  ;;  %v115_v50 = vpop.f32.mrf.mxu0 }
  0xa9   :  { %v160_v51 = vrot.slane %v135_v49, 7 }
  0xab   :  { %v162_v53 = vsel %vm161_vm0, %v115_v50, %v160_v51 }
  0xac   :  { %v164_v54 = vadd.f32 %v162_v53, %v49_v52 }
  0xae   :  { %v1267_v55 = vmul.f32 -1.442695, %v164_v54 }
  0xb0   :  { %1280 = vpow2.f32 %v1267_v55 }
  0xb6   :  { %v1281_v56 = vpop.eup %1280  ;;  %v155_v61 = vpop.f32.mrf.mxu2 }
  0xb7   :  { %v168_v57 = vadd.f32 1.0, %v1281_v56  ;;  %v185_v3 = vadd.f32 %v184_v63, %v155_v61  ;;  %v484_v61 = vld [vmem:[%s2082_s2] sm:$0x1] }
  0xb9   :  { %1282 = vrcp.f32 %v168_v57  ;;  %v180_v62 = vand.u32 2147483648, %v168_v57  ;;  %v178_v1 = vand.u32 2147483647, %v168_v57  ;;  %vm174_vm2 = vweird.f32 %v168_v57 }
  0xbb   :  { %v181_v4 = vor.u32 1.1754944e-38, %v180_v62  ;;  %vm179_vm4 = vcmp.eq.f32.partialorder %v178_v1, 8.507059e+37 }
  0xbf   :  { %v1283_v58 = vpop.eup %1282 }
  0xc0   :  { %v170_v59 = vmul.f32 %v1283_v58, %v168_v57  ;;  %vm175_vm1 = vweird.f32 %v1283_v58 }
  0xc1   :  { %vm176_vm3 = vmor %vm174_vm2, %vm175_vm1 }
  0xc2   :  { %v171_v60 = vsub.f32 1.0, %v170_v59 }
  0xc4   :  { %v172_v0 = vmul.f32 %v1283_v58, %v171_v60 }
  0xc6   :  { %v173_v2 = vadd.f32 %v1283_v58, %v172_v0 }
  0xc8   :  { %v177_v6 = vsel %vm176_vm3, %v1283_v58, %v173_v2 }
  0xc9   :  { %v182_v7 = vsel %vm179_vm4, %v181_v4, %v177_v6 }
  0xca   :  { %v186_v8 = vmul.f32 %v185_v3, %v182_v7  ;;  %v194_v14 = vrot.slane %v182_v7, 1 }
  0xcc   :  { %v190_v9 = vadd.f32 %v188_v5, %v186_v8 }
  0xce   :  { %1284 = vtanh.f32 %v190_v9 }
  0xd4   :  { %v1285_v10 = vpop.eup %1284 }
  0xd5   :  { %v192_v11 = vsub.f32 %v1585_v43, %v1285_v10 }
  0xd7   :  { %v196_v15 = vmul.f32 %v194_v14, %v192_v11  ;;  %v1767_v11 = vld [vmem:[#allocation5 + $0x168] sm:$0xff]  ;;  %v1769_v14 = vld [vmem:[#allocation5 + $0x170] sm:$0xff] }
  0xd9   :  { %v197_v17 = vadd.f32 %v1285_v10, %v196_v15  ;;  %v1773_v15 = vld [vmem:[#allocation5 + $0x150] sm:$0xff] }
  0xdb   :  { %198 = vst [vmem:[#allocation7] sm:$0x1] %v197_v17  ;;  %265 = vmatmul.f32.vlgmr.msra.gmra.mxu3 %v197_v17  ;;  %285 = vmatmul.f32.vlgmr.msrb.gmra.mxu0 %v197_v17 }
  0xdc   :  { %305 = vmatmul.f32.vlgmr.msrb.gmra.mxu1 %v197_v17  ;;  %589 = vmatpush.msra.mxu3 %v1477_v12 }
  0xdd   :  { %699 = vmatpush.msrb.mxu0 %v1767_v11  ;;  %719 = vmatpush.msrb.mxu1 %v1769_v14 }
  0xde   :  { %590 = vmatpush.msra.mxu3 %v1482_v13 }
  0xdf   :  { %700 = vmatpush.msrb.mxu0 %v1773_v15 }
  0xe0   :  { %591 = vmatpush.msra.mxu3 %v1492_v16 }
  0xe2   :  { %592 = vmatpush.msra.mxu3 %v1502_v19 }
  0xe4   :  { %593 = vmatpush.msra.mxu3 %v1512_v22 }
  0xe6   :  { %594 = vmatpush.msra.mxu3 %v1522_v25 }
  0xe8   :  { %595 = vmatpush.msra.mxu3 %v1532_v28 }
  0xea   :  { %596 = vmatpush.msra.mxu3 %v1542_v31 }
  0xec   :  { %597 = vmatpush.msra.mxu3 %v1552_v34 }
  0xee   :  { %598 = vmatpush.msra.mxu3 %v1562_v37 }
  0xf0   :  { %599 = vmatpush.msra.mxu3 %v1572_v40 }
  0xf2   :  { %600 = vmatpush.msra.mxu3 %v1588_v44 }
  0xf4   :  { %601 = vmatpush.msra.mxu3 %v1595_v45 }
  0xf6   :  { %602 = vmatpush.msra.mxu3 %v1599_v46  ;;  %v338_v46 = vrot.slane %v200_v21, 2 }
  0xf8   :  { %603 = vmatpush.msra.mxu3 %v1605_v47 }
  0xfa   :  { %604 = vmatpush.msra.mxu3 %v1611_v48 }
 0x158   :  { %v286_v18 = vpop.f32.mrf.mxu0 }
 0x159   :  { %v311_v20 = vrot.slane %v286_v18, 7  ;;  %v306_v40 = vpop.f32.mrf.mxu1  ;;  %v1780_v18 = vld [vmem:[#allocation5 + $0x138] sm:$0xff] }
 0x15a   :  { %v335_v44 = vadd.f32 %v334_v41, %v306_v40  ;;  %701 = vmatpush.msrb.mxu0 %v1780_v18  ;;  %v1819_v40 = vld [vmem:[#allocation5 + $0xc8] sm:$0xff] }
 0x15e   :  { %v266_v23 = vpop.f32.mrf.mxu3 }
 0x15f   :  { %v312_v24 = vsel %vm161_vm0, %v266_v23, %v311_v20  ;;  %v1782_v20 = vld [vmem:[#allocation5 + $0x140] sm:$0xff]  ;;  %v1789_v23 = vld [vmem:[#allocation5 + $0x128] sm:$0xff] }
 0x160   :  { %v314_v26 = vadd.f32 %v312_v24, %v200_v21  ;;  %v1787_v21 = vld [vmem:[#allocation5 + $0x120] sm:$0xff]  ;;  %v1794_v24 = vld [vmem:[#allocation5 + $0x108] sm:$0xff] }
 0x161   :  { %702 = vmatpush.msrb.mxu0 %v1787_v21 }
 0x162   :  { %v1268_v27 = vmul.f32 -1.442695, %v314_v26  ;;  %v1796_v26 = vld [vmem:[#allocation5 + $0x110] sm:$0xff] }
 0x163   :  { %703 = vmatpush.msrb.mxu0 %v1794_v24 }
 0x164   :  { %1286 = vpow2.f32 %v1268_v27  ;;  %v1801_v27 = vld [vmem:[#allocation5 + $0xf0] sm:$0xff] }
 0x165   :  { %704 = vmatpush.msrb.mxu0 %v1801_v27 }
 0x16a   :  { %v1287_v29 = vpop.eup %1286 }
 0x16b   :  { %v318_v30 = vadd.f32 1.0, %v1287_v29  ;;  %v1803_v29 = vld [vmem:[#allocation5 + $0xf8] sm:$0xff] }
 0x16d   :  { %1288 = vrcp.f32 %v318_v30  ;;  %v330_v36 = vand.u32 2147483648, %v318_v30  ;;  %v328_v39 = vand.u32 2147483647, %v318_v30  ;;  %vm324_vm6 = vweird.f32 %v318_v30 }
 0x16f   :  { %v331_v43 = vor.u32 1.1754944e-38, %v330_v36  ;;  %vm329_vm8 = vcmp.eq.f32.partialorder %v328_v39, 8.507059e+37  ;;  %v1817_v39 = vld [vmem:[#allocation5 + $0xc0] sm:$0xff] }
 0x173   :  { %v1289_v32 = vpop.eup %1288 }
 0x174   :  { %v320_v33 = vmul.f32 %v1289_v32, %v318_v30  ;;  %vm325_vm5 = vweird.f32 %v1289_v32 }
 0x175   :  { %vm326_vm7 = vmor %vm324_vm6, %vm325_vm5 }
 0x176   :  { %v321_v35 = vsub.f32 1.0, %v320_v33  ;;  %v1810_v33 = vld [vmem:[#allocation5 + $0xe0] sm:$0xff] }
 0x178   :  { %v322_v38 = vmul.f32 %v1289_v32, %v321_v35  ;;  %v1813_v35 = vld [vmem:[#allocation2 + $0x3] ss:$8 sm:$0x7] }
 0x17a   :  { %v323_v42 = vadd.f32 %v1289_v32, %v322_v38 }
 0x17c   :  { %v327_v45 = vsel %vm326_vm7, %v1289_v32, %v323_v42  ;;  %v1808_v32 = vld [vmem:[#allocation5 + $0xd8] sm:$0xff] }
 0x17d   :  { %v332_v47 = vsel %vm329_vm8, %v331_v43, %v327_v45  ;;  %705 = vmatpush.msrb.mxu0 %v1808_v32  ;;  %v1826_v43 = vld [vmem:[#allocation5 + $0xa8] sm:$0xff] }
 0x17e   :  { %v336_v48 = vmul.f32 %v335_v44, %v332_v47  ;;  %v344_v52 = vrot.slane %v332_v47, 1  ;;  %v1828_v44 = vld [vmem:[#allocation5 + $0xb0] sm:$0xff]  ;;  %v1835_v47 = vld [vmem:[#allocation5 + $0x98] sm:$0xff] }
 0x17f   :  { %706 = vmatpush.msrb.mxu0 %v1817_v39 }
 0x180   :  { %v340_v49 = vadd.f32 %v338_v46, %v336_v48  ;;  %v1833_v46 = vld [vmem:[#allocation5 + $0x90] sm:$0xff]  ;;  %v1840_v48 = vld [vmem:[#allocation5 + $0x78] sm:$0xff] }
 0x181   :  { %707 = vmatpush.msrb.mxu0 %v1826_v43 }
 0x182   :  { %1290 = vtanh.f32 %v340_v49  ;;  %v1842_v49 = vld [vmem:[#allocation5 + $0x80] sm:$0xff] }
 0x183   :  { %708 = vmatpush.msrb.mxu0 %v1833_v46 }
 0x185   :  { %709 = vmatpush.msrb.mxu0 %v1840_v48 }
 0x188   :  { %v1291_v50 = vpop.eup %1290 }
 0x189   :  { %v342_v51 = vsub.f32 %v197_v17, %v1291_v50  ;;  %v1775_v17 = vld [vmem:[#allocation5 + $0x158] sm:$0xff] }
 0x18a   :  { %720 = vmatpush.msrb.mxu1 %v1775_v17 }
 0x18b   :  { %v346_v53 = vmul.f32 %v344_v52, %v342_v51  ;;  %v1850_v51 = vld [vmem:[#allocation5 + $0x60] sm:$0xff]  ;;  %v1852_v52 = vld [vmem:[#allocation5 + $0x68] sm:$0xff] }
 0x18c   :  { %721 = vmatpush.msrb.mxu1 %v1782_v20  ;;  %710 = vmatpush.msrb.mxu0 %v1850_v51 }
 0x18d   :  { %v347_v54 = vadd.f32 %v1291_v50, %v346_v53  ;;  %v1844_v50 = vld [vmem:[#allocation5 + $0x88] sm:$0xff]  ;;  %v1854_v53 = vld [vmem:[#allocation5 + $0x70] sm:$0xff] }
 0x18e   :  { %722 = vmatpush.msrb.mxu1 %v1789_v23 }
 0x18f   :  { %348 = vst [vmem:[#allocation7 + $0x1] sm:$0x1] %v347_v54  ;;  %415 = vmatmul.f32.vlgmr.msrb.gmra.mxu2 %v347_v54  ;;  %435 = vmatmul.f32.vlgmr.msrb.gmra.mxu3 %v347_v54 }
 0x190   :  { %455 = vmatmul.f32.vlgmr.msra.gmra.mxu0 %v347_v54  ;;  %739 = vmatpush.msrb.mxu2 %v1477_v12  ;;  %v350_v12 = vld [vmem:[#allocation2 + $0x2] ss:$8 sm:$0x7] }
 0x191   :  { %v488_v2 = vrot.slane %v350_v12, 2  ;;  %849 = vmatpush.msrb.mxu3 %v1767_v11  ;;  %723 = vmatpush.msrb.mxu1 %v1796_v26 }
 0x192   :  { %740 = vmatpush.msrb.mxu2 %v1482_v13 }
 0x193   :  { %850 = vmatpush.msrb.mxu3 %v1773_v15  ;;  %724 = vmatpush.msrb.mxu1 %v1803_v29 }
 0x194   :  { %741 = vmatpush.msrb.mxu2 %v1492_v16 }
 0x195   :  { %851 = vmatpush.msrb.mxu3 %v1780_v18  ;;  %725 = vmatpush.msrb.mxu1 %v1810_v33 }
 0x196   :  { %742 = vmatpush.msrb.mxu2 %v1502_v19 }
 0x197   :  { %852 = vmatpush.msrb.mxu3 %v1787_v21  ;;  %726 = vmatpush.msrb.mxu1 %v1819_v40 }
 0x198   :  { %743 = vmatpush.msrb.mxu2 %v1512_v22 }
 0x199   :  { %853 = vmatpush.msrb.mxu3 %v1794_v24  ;;  %727 = vmatpush.msrb.mxu1 %v1828_v44 }
 0x19a   :  { %744 = vmatpush.msrb.mxu2 %v1522_v25 }
 0x19b   :  { %854 = vmatpush.msrb.mxu3 %v1801_v27  ;;  %728 = vmatpush.msrb.mxu1 %v1835_v47 }
 0x19c   :  { %745 = vmatpush.msrb.mxu2 %v1532_v28 }
 0x19d   :  { %855 = vmatpush.msrb.mxu3 %v1808_v32  ;;  %729 = vmatpush.msrb.mxu1 %v1842_v49 }
 0x19e   :  { %746 = vmatpush.msrb.mxu2 %v1542_v31 }
 0x19f   :  { %856 = vmatpush.msrb.mxu3 %v1817_v39  ;;  %730 = vmatpush.msrb.mxu1 %v1852_v52 }
 0x1a0   :  { %747 = vmatpush.msrb.mxu2 %v1552_v34 }
 0x1a1   :  { %857 = vmatpush.msrb.mxu3 %v1826_v43 }
 0x1a2   :  { %748 = vmatpush.msrb.mxu2 %v1562_v37 }
 0x1a3   :  { %858 = vmatpush.msrb.mxu3 %v1833_v46 }
 0x1a4   :  { %749 = vmatpush.msrb.mxu2 %v1844_v50 }
 0x1a5   :  { %859 = vmatpush.msrb.mxu3 %v1840_v48 }
 0x1a6   :  { %750 = vmatpush.msrb.mxu2 %v1854_v53 }
 0x1a7   :  { %860 = vmatpush.msrb.mxu3 %v1850_v51 }
 0x20d   :  { %v456_v37 = vpop.f32.mrf.mxu0 }
 0x20e   :  { %v485_v0 = vadd.f32 %v484_v61, %v456_v37 }
 0x212   :  { %v436_v55 = vpop.f32.mrf.mxu3  ;;  %v416_v13 = vpop.f32.mrf.mxu2 }
 0x213   :  { %v461_v56 = vrot.slane %v436_v55, 7  ;;  %v1862_v55 = vld [vmem:[#allocation5 + $0x50] sm:$0xff] }
 0x214   :  { %731 = vmatpush.msrb.mxu1 %v1862_v55 }
 0x215   :  { %v462_v16 = vsel %vm161_vm0, %v416_v13, %v461_v56  ;;  %v1870_v13 = vld [vmem:[#allocation5 + $0x30] sm:$0xff] }
 0x216   :  { %v464_v57 = vadd.f32 %v462_v16, %v350_v12  ;;  %v1864_v12 = vld [vmem:[#allocation5 + $0x58] sm:$0xff] }
 0x217   :  { %751 = vmatpush.msrb.mxu2 %v1864_v12  ;;  %v1872_v16 = vld [vmem:[#allocation5 + $0x38] sm:$0xff] }
 0x218   :  { %v1269_v19 = vmul.f32 -1.442695, %v464_v57  ;;  %v1874_v57 = vld [vmem:[#allocation5 + $0x40] sm:$0xff]  ;;  %732 = vmatpush.msrb.mxu1 %v1872_v16 }
 0x219   :  { %752 = vmatpush.msrb.mxu2 %v1874_v57 }
 0x21a   :  { %1292 = vpow2.f32 %v1269_v19 }
 0x220   :  { %v1293_v22 = vpop.eup %1292 }
 0x221   :  { %v468_v58 = vadd.f32 1.0, %v1293_v22  ;;  %v1880_v22 = vld [vmem:[#allocation5 + $0x18] sm:$0xff] }
 0x223   :  { %1294 = vrcp.f32 %v468_v58  ;;  %v480_v31 = vand.u32 2147483648, %v468_v58  ;;  %v478_v34 = vand.u32 2147483647, %v468_v58  ;;  %vm474_vm10 = vweird.f32 %v468_v58 }
 0x225   :  { %v481_v63 = vor.u32 1.1754944e-38, %v480_v31  ;;  %vm479_vm12 = vcmp.eq.f32.partialorder %v478_v34, 8.507059e+37  ;;  %v1894_v31 = vld [vmem:[#allocation5 + $0x10] sm:$0xff] }
 0x229   :  { %v1295_v25 = vpop.eup %1294 }
 0x22a   :  { %v470_v28 = vmul.f32 %v1295_v25, %v468_v58  ;;  %vm475_vm9 = vweird.f32 %v1295_v25  ;;  %v1882_v58 = vld [vmem:[#allocation5 + $0x20] sm:$0xff] }
 0x22b   :  { %vm476_vm11 = vmor %vm474_vm10, %vm475_vm9  ;;  %733 = vmatpush.msrb.mxu1 %v1882_v58 }
 0x22c   :  { %v471_v59 = vsub.f32 1.0, %v470_v28  ;;  %v1890_v28 = vld [vmem:[#allocation5] sm:$0xff] }
 0x22e   :  { %v472_v60 = vmul.f32 %v1295_v25, %v471_v59  ;;  %v1892_v59 = vld [vmem:[#allocation5 + $0x8] sm:$0xff] }
 0x22f   :  { %734 = vmatpush.msrb.mxu1 %v1892_v59 }
 0x230   :  { %v473_v62 = vadd.f32 %v1295_v25, %v472_v60 }
 0x232   :  { %v477_v1 = vsel %vm476_vm11, %v1295_v25, %v473_v62  ;;  %v1884_v25 = vld [vmem:[#allocation5 + $0x28] sm:$0xff] }
 0x233   :  { %v482_v3 = vsel %vm479_vm12, %v481_v63, %v477_v1  ;;  %753 = vmatpush.msrb.mxu2 %v1884_v25  ;;  %v634_v1 = vld [vmem:[%s2082_s2] sm:$0x1] }
 0x234   :  { %v486_v4 = vmul.f32 %v485_v0, %v482_v3  ;;  %v494_v7 = vrot.slane %v482_v3, 1 }
 0x235   :  { %754 = vmatpush.msrb.mxu2 %v1894_v31 }
 0x236   :  { %v490_v5 = vadd.f32 %v488_v2, %v486_v4 }
 0x238   :  { %1296 = vtanh.f32 %v490_v5 }
 0x23e   :  { %v1297_v6 = vpop.eup %1296 }
 0x23f   :  { %v492_v8 = vsub.f32 %v347_v54, %v1297_v6  ;;  %v1860_v54 = vld [vmem:[#allocation5 + $0x48] sm:$0xff] }
 0x240   :  { %711 = vmatpush.msrb.mxu0 %v1860_v54  ;;  %861 = vmatpush.msrb.mxu3 %v1860_v54 }
 0x241   :  { %v496_v9 = vmul.f32 %v494_v7, %v492_v8 }
 0x242   :  { %712 = vmatpush.msrb.mxu0 %v1870_v13  ;;  %862 = vmatpush.msrb.mxu3 %v1870_v13 }
 0x243   :  { %v1761_v10 = vadd.f32 %v1297_v6, %v496_v9  ;;  %v638_v6 = vrot.slane %v1813_v35, 2 }
 0x244   :  { %713 = vmatpush.msrb.mxu0 %v1880_v22  ;;  %863 = vmatpush.msrb.mxu3 %v1880_v22 }
 0x245   :  { %498 = vst [vmem:[#allocation7 + $0x2] sm:$0x1] %v1761_v10  ;;  %565 = vmatmul.f32.vlgmr.msra.gmra.mxu1 %v1761_v10  ;;  %585 = vmatmul.f32.vlgmr.msra.gmra.mxu2 %v1761_v10 }
 0x246   :  { %605 = vmatmul.f32.vlgmr.msra.gmra.mxu3 %v1761_v10  ;;  %714 = vmatpush.msrb.mxu0 %v1890_v28 }
 0x247   :  { %864 = vmatpush.msrb.mxu3 %v1890_v28  ;;  %999 = vmatpush.msra.mxu2 %v1767_v11 }
 0x248   :  { %869 = vmatpush.msra.mxu0 %v1769_v14 }
 0x249   :  { %1019 = vmatpush.msra.mxu3 %v1769_v14  ;;  %1000 = vmatpush.msra.mxu2 %v1773_v15 }
 0x24a   :  { %870 = vmatpush.msra.mxu0 %v1775_v17 }
 0x24b   :  { %1020 = vmatpush.msra.mxu3 %v1775_v17  ;;  %1001 = vmatpush.msra.mxu2 %v1780_v18 }
 0x24c   :  { %871 = vmatpush.msra.mxu0 %v1782_v20 }
 0x24d   :  { %1021 = vmatpush.msra.mxu3 %v1782_v20  ;;  %1002 = vmatpush.msra.mxu2 %v1787_v21 }
 0x24e   :  { %872 = vmatpush.msra.mxu0 %v1789_v23 }
 0x24f   :  { %1022 = vmatpush.msra.mxu3 %v1789_v23  ;;  %1003 = vmatpush.msra.mxu2 %v1794_v24 }
 0x250   :  { %873 = vmatpush.msra.mxu0 %v1796_v26 }
 0x251   :  { %1023 = vmatpush.msra.mxu3 %v1796_v26  ;;  %1004 = vmatpush.msra.mxu2 %v1801_v27 }
 0x252   :  { %874 = vmatpush.msra.mxu0 %v1803_v29 }
 0x253   :  { %1024 = vmatpush.msra.mxu3 %v1803_v29  ;;  %1005 = vmatpush.msra.mxu2 %v1808_v32 }
 0x254   :  { %875 = vmatpush.msra.mxu0 %v1810_v33 }
 0x255   :  { %1025 = vmatpush.msra.mxu3 %v1810_v33  ;;  %1006 = vmatpush.msra.mxu2 %v1817_v39 }
 0x256   :  { %876 = vmatpush.msra.mxu0 %v1819_v40 }
 0x257   :  { %1026 = vmatpush.msra.mxu3 %v1819_v40  ;;  %1007 = vmatpush.msra.mxu2 %v1826_v43 }
 0x258   :  { %877 = vmatpush.msra.mxu0 %v1828_v44 }
 0x259   :  { %1027 = vmatpush.msra.mxu3 %v1828_v44  ;;  %1008 = vmatpush.msra.mxu2 %v1833_v46 }
 0x25a   :  { %878 = vmatpush.msra.mxu0 %v1835_v47 }
 0x25b   :  { %1028 = vmatpush.msra.mxu3 %v1835_v47  ;;  %1009 = vmatpush.msra.mxu2 %v1840_v48 }
 0x25c   :  { %879 = vmatpush.msra.mxu0 %v1842_v49 }
 0x25d   :  { %1029 = vmatpush.msra.mxu3 %v1842_v49  ;;  %1010 = vmatpush.msra.mxu2 %v1850_v51 }
 0x25e   :  { %880 = vmatpush.msra.mxu0 %v1852_v52 }
 0x25f   :  { %1030 = vmatpush.msra.mxu3 %v1852_v52  ;;  %1011 = vmatpush.msra.mxu2 %v1860_v54 }
 0x260   :  { %881 = vmatpush.msra.mxu0 %v1862_v55 }
 0x261   :  { %1031 = vmatpush.msra.mxu3 %v1862_v55  ;;  %1012 = vmatpush.msra.mxu2 %v1870_v13 }
 0x262   :  { %882 = vmatpush.msra.mxu0 %v1872_v16 }
 0x263   :  { %1032 = vmatpush.msra.mxu3 %v1872_v16  ;;  %1013 = vmatpush.msra.mxu2 %v1880_v22 }
 0x264   :  { %883 = vmatpush.msra.mxu0 %v1882_v58 }
 0x265   :  { %1033 = vmatpush.msra.mxu3 %v1882_v58  ;;  %1014 = vmatpush.msra.mxu2 %v1890_v28 }
 0x266   :  { %884 = vmatpush.msra.mxu0 %v1892_v59 }
 0x267   :  { %1034 = vmatpush.msra.mxu3 %v1892_v59 }
 0x2c2   :  { %v566_v38 = vpop.f32.mrf.mxu1 }
 0x2c8   :  { %v586_v30 = vpop.f32.mrf.mxu2 }
 0x2c9   :  { %v611_v36 = vrot.slane %v586_v30, 7  ;;  %v606_v0 = vpop.f32.mrf.mxu3 }
 0x2ca   :  { %v635_v5 = vadd.f32 %v634_v1, %v606_v0 }
 0x2cb   :  { %v612_v41 = vsel %vm161_vm0, %v566_v38, %v611_v36 }
 0x2cc   :  { %v614_v42 = vadd.f32 %v612_v41, %v1813_v35 }
 0x2ce   :  { %v1270_v45 = vmul.f32 -1.442695, %v614_v42 }
 0x2d0   :  { %1298 = vpow2.f32 %v1270_v45  ;;  %v2004_v45 = vld [vmem:[#allocation5 + $0xd0] sm:$0xff] }
 0x2d6   :  { %v1299_v56 = vpop.eup %1298 }
 0x2d7   :  { %v618_v19 = vadd.f32 1.0, %v1299_v56  ;;  %v2013_v56 = vld [vmem:[#allocation5 + $0xa0] sm:$0xff] }
 0x2d9   :  { %1300 = vrcp.f32 %v618_v19  ;;  %v630_v61 = vand.u32 2147483648, %v618_v19  ;;  %v628_v63 = vand.u32 2147483647, %v618_v19  ;;  %vm624_vm14 = vweird.f32 %v618_v19 }
 0x2db   :  { %v631_v3 = vor.u32 1.1754944e-38, %v630_v61  ;;  %vm629_vm1 = vcmp.eq.f32.partialorder %v628_v63, 8.507059e+37 }
 0x2df   :  { %v1301_v60 = vpop.eup %1300 }
 0x2e0   :  { %v620_v34 = vmul.f32 %v1301_v60, %v618_v19  ;;  %vm625_vm13 = vweird.f32 %v1301_v60 }
 0x2e1   :  { %vm626_vm15 = vmor %vm624_vm14, %vm625_vm13 }
 0x2e2   :  { %v621_v37 = vsub.f32 1.0, %v620_v34 }
 0x2e4   :  { %v622_v62 = vmul.f32 %v1301_v60, %v621_v37 }
 0x2e6   :  { %v623_v2 = vadd.f32 %v1301_v60, %v622_v62 }
 0x2e8   :  { %v627_v4 = vsel %vm626_vm15, %v1301_v60, %v623_v2 }
 0x2e9   :  { %v632_v7 = vsel %vm629_vm1, %v631_v3, %v627_v4 }
 0x2ea   :  { %v636_v8 = vmul.f32 %v635_v5, %v632_v7  ;;  %v644_v36 = vrot.slane %v632_v7, 1  ;;  %v934_v7 = vld [vmem:[%s2082_s2] sm:$0x1] }
 0x2ec   :  { %v640_v9 = vadd.f32 %v638_v6, %v636_v8 }
 0x2ee   :  { %1302 = vtanh.f32 %v640_v9 }
 0x2f4   :  { %v1303_v30 = vpop.eup %1302 }
 0x2f5   :  { %v642_v35 = vsub.f32 %v1761_v10, %v1303_v30  ;;  %v1976_v10 = vld [vmem:[#allocation5 + $0x178] sm:$0xff] }
 0x2f6   :  { %889 = vmatpush.msra.mxu1 %v1976_v10 }
 0x2f7   :  { %v646_v38 = vmul.f32 %v644_v36, %v642_v35 }
 0x2f9   :  { %v1949_v41 = vadd.f32 %v1303_v30, %v646_v38 }
 0x2fb   :  { %648 = vst [vmem:[#allocation7 + $0x3] sm:$0x1] %v1949_v41  ;;  %715 = vmatmul.f32.vlgmr.msrb.gmra.mxu0 %v1949_v41  ;;  %735 = vmatmul.f32.vlgmr.msrb.gmra.mxu1 %v1949_v41 }
 0x2fc   :  { %755 = vmatmul.f32.vlgmr.msrb.gmra.mxu2 %v1949_v41  ;;  %1039 = vmatpush.msrb.mxu0 %v1976_v10 }
 0x2fd   :  { %1169 = vmatpush.msrb.mxu2 %v1769_v14  ;;  %v1980_v14 = vld [vmem:[#allocation5 + $0x160] sm:$0xff] }
 0x2fe   :  { %890 = vmatpush.msra.mxu1 %v1980_v14  ;;  %1040 = vmatpush.msrb.mxu0 %v1980_v14 }
 0x2ff   :  { %1170 = vmatpush.msrb.mxu2 %v1775_v17  ;;  %v1984_v17 = vld [vmem:[#allocation5 + $0x148] sm:$0xff] }
 0x300   :  { %891 = vmatpush.msra.mxu1 %v1984_v17  ;;  %1041 = vmatpush.msrb.mxu0 %v1984_v17 }
 0x301   :  { %1171 = vmatpush.msrb.mxu2 %v1782_v20  ;;  %v1988_v20 = vld [vmem:[#allocation5 + $0x130] sm:$0xff] }
 0x302   :  { %892 = vmatpush.msra.mxu1 %v1988_v20  ;;  %1042 = vmatpush.msrb.mxu0 %v1988_v20 }
 0x303   :  { %1172 = vmatpush.msrb.mxu2 %v1789_v23  ;;  %v1992_v23 = vld [vmem:[#allocation5 + $0x118] sm:$0xff] }
 0x304   :  { %893 = vmatpush.msra.mxu1 %v1992_v23  ;;  %1043 = vmatpush.msrb.mxu0 %v1992_v23 }
 0x305   :  { %1173 = vmatpush.msrb.mxu2 %v1796_v26  ;;  %v1996_v26 = vld [vmem:[#allocation5 + $0x100] sm:$0xff] }
 0x306   :  { %894 = vmatpush.msra.mxu1 %v1996_v26  ;;  %1044 = vmatpush.msrb.mxu0 %v1996_v26 }
 0x307   :  { %1174 = vmatpush.msrb.mxu2 %v1803_v29 }
 0x309   :  { %1175 = vmatpush.msrb.mxu2 %v1810_v33  ;;  %v2000_v33 = vld [vmem:[#allocation5 + $0xe8] sm:$0xff] }
 0x30a   :  { %895 = vmatpush.msra.mxu1 %v2000_v33  ;;  %1045 = vmatpush.msrb.mxu0 %v2000_v33 }
 0x30b   :  { %1176 = vmatpush.msrb.mxu2 %v1819_v40  ;;  %v650_v40 = vld [vmem:[#allocation2 + $0x4] ss:$8 sm:$0x7] }
 0x30c   :  { %896 = vmatpush.msra.mxu1 %v2004_v45  ;;  %1046 = vmatpush.msrb.mxu0 %v2004_v45  ;;  %v788_v0 = vrot.slane %v650_v40, 2 }
 0x30d   :  { %1177 = vmatpush.msrb.mxu2 %v1828_v44 }
 0x30f   :  { %1178 = vmatpush.msrb.mxu2 %v1835_v47 }
 0x311   :  { %1179 = vmatpush.msrb.mxu2 %v1842_v49 }
 0x313   :  { %1180 = vmatpush.msrb.mxu2 %v1852_v52  ;;  %v2009_v52 = vld [vmem:[#allocation5 + $0xb8] sm:$0xff] }
 0x314   :  { %897 = vmatpush.msra.mxu1 %v2009_v52  ;;  %1047 = vmatpush.msrb.mxu0 %v2009_v52 }
 0x315   :  { %1181 = vmatpush.msrb.mxu2 %v1862_v55 }
 0x316   :  { %898 = vmatpush.msra.mxu1 %v2013_v56  ;;  %1048 = vmatpush.msrb.mxu0 %v2013_v56 }
 0x317   :  { %1182 = vmatpush.msrb.mxu2 %v1872_v16 }
 0x318   :  { %899 = vmatpush.msra.mxu1 %v1844_v50  ;;  %1049 = vmatpush.msrb.mxu0 %v1844_v50 }
 0x319   :  { %1183 = vmatpush.msrb.mxu2 %v1882_v58 }
 0x31a   :  { %900 = vmatpush.msra.mxu1 %v1854_v53  ;;  %1050 = vmatpush.msrb.mxu0 %v1854_v53 }
 0x31b   :  { %1184 = vmatpush.msrb.mxu2 %v1892_v59 }
 0x31c   :  { %901 = vmatpush.msra.mxu1 %v1864_v12  ;;  %1051 = vmatpush.msrb.mxu0 %v1864_v12 }
 0x31e   :  { %902 = vmatpush.msra.mxu1 %v1874_v57  ;;  %1052 = vmatpush.msrb.mxu0 %v1874_v57 }
 0x320   :  { %903 = vmatpush.msra.mxu1 %v1884_v25  ;;  %1053 = vmatpush.msrb.mxu0 %v1884_v25 }
 0x322   :  { %904 = vmatpush.msra.mxu1 %v1894_v31  ;;  %1054 = vmatpush.msrb.mxu0 %v1894_v31 }
 0x324   :  { %1149 = vmatpush.msrb.mxu1 %v1767_v11  ;;  %v784_v11 = vld [vmem:[%s2082_s2] sm:$0x1] }
 0x326   :  { %1150 = vmatpush.msrb.mxu1 %v1773_v15 }
 0x328   :  { %1151 = vmatpush.msrb.mxu1 %v1780_v18 }
 0x32a   :  { %1152 = vmatpush.msrb.mxu1 %v1787_v21 }
 0x32c   :  { %1153 = vmatpush.msrb.mxu1 %v1794_v24 }
 0x32e   :  { %1154 = vmatpush.msrb.mxu1 %v1801_v27 }
 0x330   :  { %1155 = vmatpush.msrb.mxu1 %v1808_v32 }
 0x332   :  { %1156 = vmatpush.msrb.mxu1 %v1817_v39 }
 0x334   :  { %1157 = vmatpush.msrb.mxu1 %v1826_v43 }
 0x336   :  { %1158 = vmatpush.msrb.mxu1 %v1833_v46 }
 0x338   :  { %1159 = vmatpush.msrb.mxu1 %v1840_v48  ;;  %v800_v48 = vld [vmem:[#allocation2 + $0x5] ss:$8 sm:$0x7] }
 0x339   :  { %v938_v36 = vrot.slane %v800_v48, 2 }
 0x33a   :  { %1160 = vmatpush.msrb.mxu1 %v1850_v51 }
 0x33c   :  { %1161 = vmatpush.msrb.mxu1 %v1860_v54 }
 0x33e   :  { %1162 = vmatpush.msrb.mxu1 %v1870_v13 }
 0x340   :  { %1163 = vmatpush.msrb.mxu1 %v1880_v22 }
 0x342   :  { %1164 = vmatpush.msrb.mxu1 %v1890_v28 }
 0x378   :  { %v736_v29 = vpop.f32.mrf.mxu1  ;;  %v716_v44 = vpop.f32.mrf.mxu0 }
 0x379   :  { %v761_v42 = vrot.slane %v736_v29, 7 }
 0x37b   :  { %v762_v47 = vsel %vm161_vm0, %v716_v44, %v761_v42 }
 0x37c   :  { %v764_v49 = vadd.f32 %v762_v47, %v650_v40 }
 0x37e   :  { %v1271_v55 = vmul.f32 -1.442695, %v764_v49 }
 0x37f   :  { %v756_v62 = vpop.f32.mrf.mxu2 }
 0x380   :  { %1304 = vpow2.f32 %v1271_v55  ;;  %v785_v21 = vadd.f32 %v784_v11, %v756_v62 }
 0x386   :  { %v1305_v16 = vpop.eup %1304 }
 0x387   :  { %v768_v19 = vadd.f32 1.0, %v1305_v16 }
 0x389   :  { %1306 = vrcp.f32 %v768_v19  ;;  %v780_v34 = vand.u32 2147483648, %v768_v19  ;;  %v778_v61 = vand.u32 2147483647, %v768_v19  ;;  %vm774_vm3 = vweird.f32 %v768_v19 }
 0x38b   :  { %v781_v15 = vor.u32 1.1754944e-38, %v780_v34  ;;  %vm779_vm5 = vcmp.eq.f32.partialorder %v778_v61, 8.507059e+37  ;;  %v1084_v34 = vld [vmem:[%s2082_s2] sm:$0x1] }
 0x38f   :  { %v1307_v58 = vpop.eup %1306 }
 0x390   :  { %v770_v59 = vmul.f32 %v1307_v58, %v768_v19  ;;  %vm775_vm2 = vweird.f32 %v1307_v58 }
 0x391   :  { %vm776_vm4 = vmor %vm774_vm3, %vm775_vm2 }
 0x392   :  { %v771_v60 = vsub.f32 1.0, %v770_v59 }
 0x394   :  { %v772_v37 = vmul.f32 %v1307_v58, %v771_v60 }
 0x396   :  { %v773_v63 = vadd.f32 %v1307_v58, %v772_v37 }
 0x398   :  { %v777_v18 = vsel %vm776_vm4, %v1307_v58, %v773_v63 }
 0x399   :  { %v782_v1 = vsel %vm779_vm5, %v781_v15, %v777_v18 }
 0x39a   :  { %v786_v2 = vmul.f32 %v785_v21, %v782_v1  ;;  %v794_v32 = vrot.slane %v782_v1, 1 }
 0x39c   :  { %v790_v24 = vadd.f32 %v788_v0, %v786_v2 }
 0x39e   :  { %1308 = vtanh.f32 %v790_v24 }
 0x3a4   :  { %v1309_v27 = vpop.eup %1308 }
 0x3a5   :  { %v792_v3 = vsub.f32 %v1949_v41, %v1309_v27 }
 0x3a7   :  { %v796_v4 = vmul.f32 %v794_v32, %v792_v3  ;;  %v1100_v32 = vld [vmem:[#allocation2 + $0x7] ss:$8 sm:$0x7] }
 0x3a9   :  { %v797_v39 = vadd.f32 %v1309_v27, %v796_v4 }
 0x3ab   :  { %798 = vst [vmem:[#allocation7 + $0x4] sm:$0x1] %v797_v39  ;;  %865 = vmatmul.f32.vlgmr.msrb.gmra.mxu3 %v797_v39  ;;  %885 = vmatmul.f32.vlgmr.msra.gmra.mxu0 %v797_v39 }
 0x3ac   :  { %905 = vmatmul.f32.vlgmr.msra.gmra.mxu1 %v797_v39  ;;  %1189 = vmatpush.msrb.mxu3 %v1976_v10 }
 0x3ae   :  { %1190 = vmatpush.msrb.mxu3 %v1980_v14 }
 0x3b0   :  { %1191 = vmatpush.msrb.mxu3 %v1984_v17 }
 0x3b2   :  { %1192 = vmatpush.msrb.mxu3 %v1988_v20 }
 0x3b4   :  { %1193 = vmatpush.msrb.mxu3 %v1992_v23 }
 0x3b6   :  { %1194 = vmatpush.msrb.mxu3 %v1996_v26 }
 0x3b8   :  { %1195 = vmatpush.msrb.mxu3 %v2000_v33  ;;  %v950_v33 = vld [vmem:[#allocation2 + $0x6] ss:$8 sm:$0x7] }
 0x3b9   :  { %v1088_v63 = vrot.slane %v950_v33, 2 }
 0x3ba   :  { %1196 = vmatpush.msrb.mxu3 %v2004_v45 }
 0x3bc   :  { %1197 = vmatpush.msrb.mxu3 %v2009_v52 }
 0x3be   :  { %1198 = vmatpush.msrb.mxu3 %v2013_v56 }
 0x3c0   :  { %1199 = vmatpush.msrb.mxu3 %v1844_v50 }
 0x3c2   :  { %1200 = vmatpush.msrb.mxu3 %v1854_v53 }
 0x3c4   :  { %1201 = vmatpush.msrb.mxu3 %v1864_v12 }
 0x3c6   :  { %1202 = vmatpush.msrb.mxu3 %v1874_v57 }
 0x3c8   :  { %1203 = vmatpush.msrb.mxu3 %v1884_v25 }
 0x3ca   :  { %1204 = vmatpush.msrb.mxu3 %v1894_v31 }
 0x428   :  { %v886_v43 = vpop.f32.mrf.mxu0 }
 0x429   :  { %v911_v46 = vrot.slane %v886_v43, 7  ;;  %v906_v31 = vpop.f32.mrf.mxu1 }
 0x42a   :  { %v935_v30 = vadd.f32 %v934_v7, %v906_v31 }
 0x42e   :  { %v866_v51 = vpop.f32.mrf.mxu3 }
 0x42f   :  { %v912_v54 = vsel %vm161_vm0, %v866_v51, %v911_v46 }
 0x430   :  { %v914_v13 = vadd.f32 %v912_v54, %v800_v48 }
 0x432   :  { %v1272_v22 = vmul.f32 -1.442695, %v914_v13 }
 0x434   :  { %1310 = vpow2.f32 %v1272_v22 }
 0x43a   :  { %v1311_v50 = vpop.eup %1310 }
 0x43b   :  { %v918_v28 = vadd.f32 1.0, %v1311_v50 }
 0x43d   :  { %1312 = vrcp.f32 %v918_v28  ;;  %v930_v57 = vand.u32 2147483648, %v918_v28  ;;  %v928_v25 = vand.u32 2147483647, %v918_v28  ;;  %vm924_vm7 = vweird.f32 %v918_v28 }
 0x43f   :  { %v931_v9 = vor.u32 1.1754944e-38, %v930_v57  ;;  %vm929_vm9 = vcmp.eq.f32.partialorder %v928_v25, 8.507059e+37  ;;  %v1234_v57 = vld [vmem:[%s2082_s2] sm:$0x1]  ;;  %s1256_s2 = sshll.u32 %s2084_s4, 4  ;;  %s1257_s2 = int_to_ptr.hbm [resolvable:$true] %s1256_s2 }
 0x443   :  { %v1313_v53 = vpop.eup %1312 }
 0x444   :  { %v920_v12 = vmul.f32 %v1313_v53, %v918_v28  ;;  %vm925_vm6 = vweird.f32 %v1313_v53 }
 0x445   :  { %vm926_vm8 = vmor %vm924_vm7, %vm925_vm6 }
 0x446   :  { %v921_v5 = vsub.f32 1.0, %v920_v12 }
 0x448   :  { %v922_v6 = vmul.f32 %v1313_v53, %v921_v5 }
 0x44a   :  { %v923_v8 = vadd.f32 %v1313_v53, %v922_v6 }
 0x44c   :  { %v927_v35 = vsel %vm926_vm8, %v1313_v53, %v923_v8  ;;  %v1238_v8 = vrot.slane %v1100_v32, 2 }
 0x44d   :  { %v932_v38 = vsel %vm929_vm9, %v931_v9, %v927_v35 }
 0x44e   :  { %v936_v41 = vmul.f32 %v935_v30, %v932_v38  ;;  %v944_v20 = vrot.slane %v932_v38, 1 }
 0x450   :  { %v940_v10 = vadd.f32 %v938_v36, %v936_v41 }
 0x452   :  { %1314 = vtanh.f32 %v940_v10 }
 0x458   :  { %v1315_v14 = vpop.eup %1314 }
 0x459   :  { %v942_v17 = vsub.f32 %v797_v39, %v1315_v14 }
 0x45b   :  { %v946_v23 = vmul.f32 %v944_v20, %v942_v17 }
 0x45d   :  { %v947_v26 = vadd.f32 %v1315_v14, %v946_v23 }
 0x45f   :  { %948 = vst [vmem:[#allocation7 + $0x5] sm:$0x1] %v947_v26  ;;  %1015 = vmatmul.f32.vlgmr.msra.gmra.mxu2 %v947_v26  ;;  %1035 = vmatmul.f32.vlgmr.msra.gmra.mxu3 %v947_v26 }
 0x460   :  { %1055 = vmatmul.f32.vlgmr.msrb.gmra.mxu0 %v947_v26 }
 0x4dd   :  { %v1056_v60 = vpop.f32.mrf.mxu0 }
 0x4de   :  { %v1085_v62 = vadd.f32 %v1084_v34, %v1056_v60 }
 0x4e2   :  { %v1036_v29 = vpop.f32.mrf.mxu3  ;;  %v1016_v42 = vpop.f32.mrf.mxu2 }
 0x4e3   :  { %v1061_v40 = vrot.slane %v1036_v29, 7 }
 0x4e5   :  { %v1062_v44 = vsel %vm161_vm0, %v1016_v42, %v1061_v40 }
 0x4e6   :  { %v1064_v45 = vadd.f32 %v1062_v44, %v950_v33 }
 0x4e8   :  { %v1273_v47 = vmul.f32 -1.442695, %v1064_v45 }
 0x4ea   :  { %1316 = vpow2.f32 %v1273_v47 }
 0x4f0   :  { %v1317_v49 = vpop.eup %1316 }
 0x4f1   :  { %v1068_v52 = vadd.f32 1.0, %v1317_v49 }
 0x4f3   :  { %1318 = vrcp.f32 %v1068_v52  ;;  %v1080_v19 = vand.u32 2147483648, %v1068_v52  ;;  %v1078_v59 = vand.u32 2147483647, %v1068_v52  ;;  %vm1074_vm11 = vweird.f32 %v1068_v52 }
 0x4f5   :  { %v1081_v61 = vor.u32 1.1754944e-38, %v1080_v19  ;;  %vm1079_vm13 = vcmp.eq.f32.partialorder %v1078_v59, 8.507059e+37 }
 0x4f9   :  { %v1319_v55 = vpop.eup %1318 }
 0x4fa   :  { %v1070_v56 = vmul.f32 %v1319_v55, %v1068_v52  ;;  %vm1075_vm10 = vweird.f32 %v1319_v55 }
 0x4fb   :  { %vm1076_vm12 = vmor %vm1074_vm11, %vm1075_vm10 }
 0x4fc   :  { %v1071_v16 = vsub.f32 1.0, %v1070_v56 }
 0x4fe   :  { %v1072_v58 = vmul.f32 %v1319_v55, %v1071_v16 }
 0x500   :  { %v1073_v37 = vadd.f32 %v1319_v55, %v1072_v58 }
 0x502   :  { %v1077_v11 = vsel %vm1076_vm12, %v1319_v55, %v1073_v37 }
 0x503   :  { %v1082_v15 = vsel %vm1079_vm13, %v1081_v61, %v1077_v11 }
 0x504   :  { %v1086_v18 = vmul.f32 %v1085_v62, %v1082_v15  ;;  %v1094_v1 = vrot.slane %v1082_v15, 1 }
 0x506   :  { %v1090_v21 = vadd.f32 %v1088_v63, %v1086_v18 }
 0x508   :  { %1320 = vtanh.f32 %v1090_v21 }
 0x50e   :  { %v1321_v0 = vpop.eup %1320 }
 0x50f   :  { %v1092_v2 = vsub.f32 %v947_v26, %v1321_v0 }
 0x511   :  { %v1096_v24 = vmul.f32 %v1094_v1, %v1092_v2 }
 0x513   :  { %v1097_v27 = vadd.f32 %v1321_v0, %v1096_v24 }
 0x515   :  { %1098 = vst [vmem:[#allocation7 + $0x6] sm:$0x1] %v1097_v27  ;;  %1165 = vmatmul.f32.vlgmr.msrb.gmra.mxu1 %v1097_v27  ;;  %1185 = vmatmul.f32.vlgmr.msrb.gmra.mxu2 %v1097_v27 }
 0x516   :  { %1205 = vmatmul.f32.vlgmr.msrb.gmra.mxu3 %v1097_v27 }
 0x592   :  { %v1166_v39 = vpop.f32.mrf.mxu1 }
 0x598   :  { %v1186_v3 = vpop.f32.mrf.mxu2 }
 0x599   :  { %v1211_v4 = vrot.slane %v1186_v3, 7  ;;  %v1206_v5 = vpop.f32.mrf.mxu3 }
 0x59a   :  { %v1235_v7 = vadd.f32 %v1234_v57, %v1206_v5 }
 0x59b   :  { %v1212_v43 = vsel %vm161_vm0, %v1166_v39, %v1211_v4 }
 0x59c   :  { %v1214_v46 = vadd.f32 %v1212_v43, %v1100_v32 }
 0x59e   :  { %v1274_v48 = vmul.f32 -1.442695, %v1214_v46 }
 0x5a0   :  { %1322 = vpow2.f32 %v1274_v48 }
 0x5a6   :  { %v1323_v51 = vpop.eup %1322 }
 0x5a7   :  { %v1218_v54 = vadd.f32 1.0, %v1323_v51 }
 0x5a9   :  { %1324 = vrcp.f32 %v1218_v54  ;;  %v1230_v28 = vand.u32 2147483648, %v1218_v54  ;;  %v1228_v12 = vand.u32 2147483647, %v1218_v54  ;;  %vm1224_vm0 = vweird.f32 %v1218_v54 }
 0x5ab   :  { %v1231_v25 = vor.u32 1.1754944e-38, %v1230_v28  ;;  %vm1229_vm1 = vcmp.eq.f32.partialorder %v1228_v12, 8.507059e+37 }
 0x5af   :  { %v1325_v13 = vpop.eup %1324 }
 0x5b0   :  { %v1220_v22 = vmul.f32 %v1325_v13, %v1218_v54  ;;  %vm1225_vm14 = vweird.f32 %v1325_v13 }
 0x5b1   :  { %vm1226_vm15 = vmor %vm1224_vm0, %vm1225_vm14 }
 0x5b2   :  { %v1221_v50 = vsub.f32 1.0, %v1220_v22 }
 0x5b4   :  { %v1222_v53 = vmul.f32 %v1325_v13, %v1221_v50 }
 0x5b6   :  { %v1223_v6 = vadd.f32 %v1325_v13, %v1222_v53 }
 0x5b8   :  { %v1227_v31 = vsel %vm1226_vm15, %v1325_v13, %v1223_v6 }
 0x5b9   :  { %v1232_v9 = vsel %vm1229_vm1, %v1231_v25, %v1227_v31 }
 0x5ba   :  { %v1236_v30 = vmul.f32 %v1235_v7, %v1232_v9  ;;  %v1244_v41 = vrot.slane %v1232_v9, 1 }
 0x5bc   :  { %v1240_v35 = vadd.f32 %v1238_v8, %v1236_v30 }
 0x5be   :  { %1326 = vtanh.f32 %v1240_v35 }
 0x5c4   :  { %v1327_v36 = vpop.eup %1326 }
 0x5c5   :  { %v1242_v38 = vsub.f32 %v1097_v27, %v1327_v36 }
 0x5c7   :  { %v1246_v10 = vmul.f32 %v1244_v41, %v1242_v38 }
 0x5c9   :  { %v1247_v14 = vadd.f32 %v1327_v36, %v1246_v10 }
 0x5cb   :  { %1248 = vst [vmem:[#allocation7 + $0x7] sm:$0x1] %v1247_v14 }
 0x5cc   :  { %1259 = dma.vmem_to_hbm [thread:$0]  %s1255_s17, 128, %s1257_s2, [#allocation4]  }
 0x5cd   :  { %1404 = dma.done.wait [#allocation4], 128  }
 0x5ce   :  { %1405 = vsyncadd [#allocation4], 4294967168 }
 0x5cf   :  { %1264 = vsyncpa [#allocation3], 1 }
 0x5d0   :  { %1265 = vsyncpa [#allocation6], 1 }
 0x5d1   :  { %1266 = vsyncpa [#allocation4], 1 }

</bundles_post_ra>
